<compile_context>
chip_gen: v7x
topology: tpu7x:2x2x1
jax: 0.10.0
libtpu: 0.0.40
codegen_flags: <defaults>
</compile_context>

<pallas_src>
import functools

import jax
import jax.numpy as jnp
from jax import lax
from jax.experimental import pallas as pl
from jax.experimental.pallas import tpu as pltpu


def _pick_vmem_limit():
    """Per-generation scoped-VMEM limit: ~3/4 of physical, capped at 96 MiB.

    v5e/v6e: 128 MiB physical -> 96 MiB; v7x: 64 MiB physical -> 48 MiB.
    Falls back to a 48 MiB-safe value if the hardware query is unavailable.
    """
    cap = 64 << 20
    try:
        info = pltpu.get_tpu_info()
        cap = int(getattr(info, "vmem_capacity_bytes", cap) or cap)
    except Exception:
        pass
    return int(min(cap * 3 // 4, 96 << 20))


_VMEM_LIMIT = _pick_vmem_limit()


def _round_up(n, m):
    return ((n + m - 1) // m) * m


# ----------------------------- Pallas kernels ------------------------------


def _conv_bn_relu_kernel(x_ref, w_ref, s2_ref, b2_ref, o_ref, *, stride, hp, ho, wo):
    """3x3 conv (all 3 kh taps accumulated in-kernel) fused with a BN+ReLU epilogue.

    x_ref : (R*Wo, 3*Cin)   width-im2col'd activation slab (bf16) for one image
    w_ref : (3, 3*Cin, Cout) full weight slab (bf16), grid-resident (constant index_map)
    s2/b2 : (1, Cout)       folded BN2 scale/bias (f32)
    o_ref : (Ho*Wo, Cout)   output tile (bf16)
    """
    m = ho * wo
    acc = None
    for kh in range(3):                      # static unroll -> static, alignment-known slices
        if stride == 1:
            base = kh                                    # rows kh .. kh+Ho-1
        else:
            base = (kh % stride) * hp + kh // stride     # height-phase decomposed rows
        a = x_ref[pl.ds(base * wo, m), :]                # (Ho*Wo, 3*Cin) bf16
        d = jnp.dot(a, w_ref[kh], preferred_element_type=jnp.float32)
        acc = d if acc is None else acc + d
    # BN2 + ReLU epilogue in f32; (1, Cout) scale/bias broadcast once per block.
    o_ref[...] = jnp.maximum(acc * s2_ref[...] + b2_ref[...], 0.0).astype(o_ref.dtype)


def _conv_add_kernel(x_ref, w_ref, r_ref, o_ref, *, ho, wo):
    """3x3 stride-1 conv (3 kh taps in-kernel) fused with the residual add.

    r_ref is the bf16 shortcut; the accumulate is f32.
    """
    m = ho * wo
    acc = r_ref[...].astype(jnp.float32)     # init accumulator with the shortcut
    for kh in range(3):
        a = x_ref[pl.ds(kh * wo, m), :]
        acc = acc + jnp.dot(a, w_ref[kh], preferred_element_type=jnp.float32)
    o_ref[...] = acc.astype(o_ref.dtype)


def _bn_relu_matmul_kernel(x_ref, w_ref, s_ref, b_ref, o_ref):
    """1x1 shortcut conv fused with its BN1+ReLU prologue (f32 elementwise, bf16 MXU/out)."""
    a = jnp.maximum(x_ref[...].astype(jnp.float32) * s_ref[...] + b_ref[...], 0.0)
    o_ref[...] = jnp.dot(a.astype(jnp.bfloat16), w_ref[...],
                         preferred_element_type=jnp.float32).astype(o_ref.dtype)


# --------------------------- pallas_call builders ---------------------------


def _conv3x3_bn_relu(x_flat, w3, s2, b2, *, stride, hp, ho, wo):
    B, RW, K = x_flat.shape                  # K = 3*Cinp
    coutp = w3.shape[-1]
    M = ho * wo
    kernel = functools.partial(_conv_bn_relu_kernel, stride=stride, hp=hp, ho=ho, wo=wo)
    flops = 2 * B * M * 3 * K * coutp
    bytes_accessed = (x_flat.size * 2 + w3.size * 2 + B * M * coutp * 2
                      + (s2.size + b2.size) * 4)
    return pl.pallas_call(
        kernel,
        out_shape=jax.ShapeDtypeStruct((B, M, coutp), jnp.bfloat16),
        grid_spec=pltpu.PrefetchScalarGridSpec(
            num_scalar_prefetch=0,
            grid=(B,),                                       # batch only; kh taps in-kernel
            in_specs=[
                pl.BlockSpec((None, RW, K), lambda b: (b, 0, 0)),
                pl.BlockSpec((3, K, coutp), lambda b: (0, 0, 0)),   # grid-resident weights
                pl.BlockSpec((1, coutp), lambda b: (0, 0)),
                pl.BlockSpec((1, coutp), lambda b: (0, 0)),
            ],
            out_specs=pl.BlockSpec((None, M, coutp), lambda b: (b, 0, 0)),
        ),
        compiler_params=pltpu.CompilerParams(
            dimension_semantics=("parallel",),
            vmem_limit_bytes=_VMEM_LIMIT),
        cost_estimate=pl.CostEstimate(flops=flops, transcendentals=0,
                                      bytes_accessed=bytes_accessed),
    )(x_flat, w3, s2, b2)


def _conv3x3_add(x_flat, w3, res, *, ho, wo):
    B, RW, K = x_flat.shape                  # K = 3*Coutp
    coutp = w3.shape[-1]
    M = ho * wo
    kernel = functools.partial(_conv_add_kernel, ho=ho, wo=wo)
    flops = 2 * B * M * 3 * K * coutp
    bytes_accessed = x_flat.size * 2 + w3.size * 2 + res.size * 2 + B * M * coutp * 4
    return pl.pallas_call(
        kernel,
        out_shape=jax.ShapeDtypeStruct((B, M, coutp), jnp.float32),
        grid_spec=pltpu.PrefetchScalarGridSpec(
            num_scalar_prefetch=0,
            grid=(B,),
            in_specs=[
                pl.BlockSpec((None, RW, K), lambda b: (b, 0, 0)),
                pl.BlockSpec((3, K, coutp), lambda b: (0, 0, 0)),   # grid-resident weights
                pl.BlockSpec((None, M, coutp), lambda b: (b, 0, 0)),
            ],
            out_specs=pl.BlockSpec((None, M, coutp), lambda b: (b, 0, 0)),
        ),
        compiler_params=pltpu.CompilerParams(
            dimension_semantics=("parallel",),
            vmem_limit_bytes=_VMEM_LIMIT),
        cost_estimate=pl.CostEstimate(flops=flops, transcendentals=0,
                                      bytes_accessed=bytes_accessed),
    )(x_flat, w3, res)


def _shortcut_1x1(xs_flat, wsc, s1, b1):
    B, M, cinp = xs_flat.shape
    coutp = wsc.shape[-1]
    flops = 2 * B * M * cinp * coutp
    bytes_accessed = (xs_flat.size * 2 + wsc.size * 2 + (s1.size + b1.size) * 4
                      + B * M * coutp * 2)
    return pl.pallas_call(
        _bn_relu_matmul_kernel,
        out_shape=jax.ShapeDtypeStruct((B, M, coutp), jnp.bfloat16),
        grid_spec=pltpu.PrefetchScalarGridSpec(
            num_scalar_prefetch=0,
            grid=(B,),
            in_specs=[
                pl.BlockSpec((None, M, cinp), lambda b: (b, 0, 0)),
                pl.BlockSpec((cinp, coutp), lambda b: (0, 0)),
                pl.BlockSpec((1, cinp), lambda b: (0, 0)),
                pl.BlockSpec((1, cinp), lambda b: (0, 0)),
            ],
            out_specs=pl.BlockSpec((None, M, coutp), lambda b: (b, 0, 0)),
        ),
        compiler_params=pltpu.CompilerParams(
            dimension_semantics=("parallel",),
            vmem_limit_bytes=_VMEM_LIMIT),
        cost_estimate=pl.CostEstimate(flops=flops, transcendentals=0,
                                      bytes_accessed=bytes_accessed),
    )(xs_flat, wsc, s1, b1)


# ------------------------------- JAX glue -----------------------------------


def _build_conv_input(a_nhwc, stride):
    """Width-direction (3 kw taps) im2col + height phase decomposition (3x traffic, not 9x).

    a_nhwc: (B, H, W, Cp) activation, already BN/ReLU'd as needed.
    Returns (rows_flat, Hp, Ho, Wo): rows_flat is (B, R*Wo, 3*Cp) bf16; the kernel's kh tap
    reads the contiguous row window starting at ((kh % stride) * Hp + kh // stride) * Wo.
    """
    B, H, W, Cp = a_nhwc.shape
    Ho = (H - 1) // stride + 1
    Wo = (W - 1) // stride + 1
    ap = jnp.pad(a_nhwc, ((0, 0), (1, 1), (1, 1), (0, 0)))
    cols = [ap[:, :, kw:kw + stride * (Wo - 1) + 1:stride, :] for kw in range(3)]
    xw = jnp.concatenate(cols, axis=-1).astype(jnp.bfloat16)       # (B, H+2, Wo, 3*Cp)
    hpad = H + 2
    hp = -(-hpad // stride)
    if stride == 1:
        rows = xw
    else:
        phases = []
        for p in range(stride):
            ph = xw[:, p::stride]
            if ph.shape[1] < hp:
                ph = jnp.pad(ph, ((0, 0), (0, hp - ph.shape[1]), (0, 0), (0, 0)))
            phases.append(ph)
        rows = jnp.concatenate(phases, axis=1)                     # (B, stride*hp, Wo, 3*Cp)
    r = rows.shape[1]
    return rows.reshape(B, r * Wo, 3 * Cp), hp, Ho, Wo


def _prep_w3x3(w, cinp, coutp):
    """OIHW (Cout, Cin, 3, 3) -> (3 kh taps, 3*Cinp, Coutp) bf16, channel-padded."""
    cout, cin = w.shape[0], w.shape[1]
    wt = jnp.transpose(w, (2, 3, 1, 0))                            # (kh, kw, Cin, Cout)
    wt = jnp.pad(wt, ((0, 0), (0, 0), (0, cinp - cin), (0, coutp - cout)))
    return wt.reshape(3, 3 * cinp, coutp).astype(jnp.bfloat16)


def _pad_vec(v, n):
    return jnp.pad(v, (0, n - v.shape[0]))


def make_basic_block_params(key, in_planes, out_planes, stride):
    """Deterministic synthetic parameters with the shapes implied by __init__."""
    del stride
    ks = jax.random.split(key, 12)
    eps = 1e-5
    p = {}
    p["w1"] = 0.1 * jax.random.normal(ks[0], (out_planes, in_planes, 3, 3), jnp.float32)
    p["w2"] = 0.1 * jax.random.normal(ks[1], (out_planes, out_planes, 3, 3), jnp.float32)

    g1 = 1.0 + 0.1 * jax.random.normal(ks[2], (in_planes,), jnp.float32)
    b1 = 0.1 * jax.random.normal(ks[3], (in_planes,), jnp.float32)
    m1 = 0.1 * jax.random.normal(ks[4], (in_planes,), jnp.float32)
    v1 = jax.random.uniform(ks[5], (in_planes,), jnp.float32, 0.5, 1.5)
    p["bn1_scale"] = g1 / jnp.sqrt(v1 + eps)
    p["bn1_bias"] = b1 - m1 * p["bn1_scale"]

    g2 = 1.0 + 0.1 * jax.random.normal(ks[6], (out_planes,), jnp.float32)
    b2 = 0.1 * jax.random.normal(ks[7], (out_planes,), jnp.float32)
    m2 = 0.1 * jax.random.normal(ks[8], (out_planes,), jnp.float32)
    v2 = jax.random.uniform(ks[9], (out_planes,), jnp.float32, 0.5, 1.5)
    p["bn2_scale"] = g2 / jnp.sqrt(v2 + eps)
    p["bn2_bias"] = b2 - m2 * p["bn2_scale"]

    if in_planes != out_planes:
        p["wsc"] = 0.1 * jax.random.normal(ks[10], (out_planes, in_planes, 1, 1), jnp.float32)
    return p


def basic_block_forward(x_nchw, params, stride, in_planes, out_planes, drop_rate=0.0):
    assert drop_rate == 0.0  # TODO(synk): dropout path not implemented (default dropRate=0.0)
    equal = (in_planes == out_planes)
    B, _, H, W = x_nchw.shape
    cinp = _round_up(in_planes, 128)    # lane-dense channel padding (no-op at real WRN widths)
    coutp = _round_up(out_planes, 128)

    x = jnp.transpose(x_nchw, (0, 2, 3, 1)).astype(jnp.float32)          # NCHW -> NHWC
    xcp = jnp.pad(x, ((0, 0), (0, 0), (0, 0), (0, cinp - in_planes)))

    s1 = _pad_vec(params["bn1_scale"], cinp)
    b1 = _pad_vec(params["bn1_bias"], cinp)
    s2 = _pad_vec(params["bn2_scale"], coutp)
    b2 = _pad_vec(params["bn2_bias"], coutp)

    # BN1 + ReLU: fused by XLA into the im2col slab construction below, so `a1` is never
    # written to HBM on its own (only the 3x slab that conv1 consumes is materialized).
    a1 = jnp.maximum(xcp * s1 + b1, 0.0)

    # ---- conv1 (3x3, stride) fused with BN2 + ReLU epilogue ----
    x1_flat, hp1, Ho, Wo = _build_conv_input(a1, stride)
    M = Ho * Wo
    w1 = _prep_w3x3(params["w1"], cinp, coutp)
    a2_flat = _conv3x3_bn_relu(x1_flat, w1, s2.reshape(1, coutp), b2.reshape(1, coutp),
                               stride=stride, hp=hp1, ho=Ho, wo=Wo)      # (B, M, Coutp) bf16

    # ---- shortcut branch (bf16 residual; accumulate in conv2 is f32) ----
    if equal:
        assert stride == 1
        res = xcp.reshape(B, M, coutp).astype(jnp.bfloat16)             # identity on raw x
    else:
        xs = xcp[:, ::stride, ::stride, :].reshape(B, M, cinp).astype(jnp.bfloat16)
        wsc = params["wsc"].reshape(out_planes, in_planes).T             # (Cin, Cout)
        wsc = jnp.pad(wsc, ((0, cinp - in_planes), (0, coutp - out_planes))).astype(jnp.bfloat16)
        res = _shortcut_1x1(xs, wsc, s1.reshape(1, cinp), b1.reshape(1, cinp))  # bf16

    # ---- conv2 (3x3, stride 1) fused with the residual add ----
    a2 = a2_flat.reshape(B, Ho, Wo, coutp)
    x2_flat, _, _, _ = _build_conv_input(a2, 1)
    w2 = _prep_w3x3(params["w2"], coutp, coutp)
    out_flat = _conv3x3_add(x2_flat, w2, res, ho=Ho, wo=Wo)              # (B, M, Coutp) f32

    out = out_flat.reshape(B, Ho, Wo, coutp)[:, :, :, :out_planes]
    return jnp.transpose(out, (0, 3, 1, 2))                              # NHWC -> NCHW


# ------------------------- pure-JAX reference (NCHW, f32) -------------------------


def _ref_forward(x, params, stride, in_planes, out_planes):
    equal = (in_planes == out_planes)
    dn = ('NCHW', 'OIHW', 'NCHW')

    def bn(v, s, b):
        return v * s[None, :, None, None] + b[None, :, None, None]

    a1 = jax.nn.relu(bn(x, params["bn1_scale"], params["bn1_bias"]))
    c1 = lax.conv_general_dilated(a1, params["w1"], (stride, stride), ((1, 1), (1, 1)),
                                  dimension_numbers=dn, precision=lax.Precision.HIGHEST)
    a2 = jax.nn.relu(bn(c1, params["bn2_scale"], params["bn2_bias"]))
    c2 = lax.conv_general_dilated(a2, params["w2"], (1, 1), ((1, 1), (1, 1)),
                                  dimension_numbers=dn, precision=lax.Precision.HIGHEST)
    if equal:
        short = x
    else:
        short = lax.conv_general_dilated(a1, params["wsc"], (stride, stride), ((0, 0), (0, 0)),
                                         dimension_numbers=dn, precision=lax.Precision.HIGHEST)
    return short + c2


# ---------------------------------- main ------------------------------------


if __name__ == "__main__":
    key = jax.random.PRNGKey(0)
    kx1, kx2, kp1, kp2 = jax.random.split(key, 4)
    B, H, W = 2, 16, 16
    # bf16 MXU operands / bf16 residual (f32 accumulate) -> compare against an f32 reference
    # with a bf16-aware tolerance; a real indexing/fusion bug would produce O(0.3+) errors.
    RTOL = ATOL = 3e-2

    # case A: equalInOut (identity shortcut), in == out, stride 1
    in_p, out_p, stride = 8, 8, 1
    params_a = make_basic_block_params(kp1, in_p, out_p, stride)
    xa = jax.random.normal(kx1, (B, in_p, H, W), jnp.float32)
    ya = basic_block_forward(xa, params_a, stride, in_p, out_p)
    jax.block_until_ready(ya)
    ra = _ref_forward(xa, params_a, stride, in_p, out_p)
    assert ya.shape == (B, out_p, H, W)
    assert jnp.allclose(ya, ra, rtol=RTOL, atol=ATOL), "mismatch (equalInOut path)"

    # case B: channel expansion + stride 2 (1x1 convShortcut path)
    in_p, out_p, stride = 4, 8, 2
    params_b = make_basic_block_params(kp2, in_p, out_p, stride)
    xb = jax.random.normal(kx2, (B, in_p, H, W), jnp.float32)
    yb = basic_block_forward(xb, params_b, stride, in_p, out_p)
    jax.block_until_ready(yb)
    rb = _ref_forward(xb, params_b, stride, in_p, out_p)
    assert yb.shape == (B, out_p, H // 2, W // 2)
    assert jnp.allclose(yb, rb, rtol=RTOL, atol=ATOL), "mismatch (convShortcut path)"

    print("KERNEL_OK")
</pallas_src>

<mosaic_0001>
module attributes {stable_mosaic.version = 11 : i64} {
  func.func @_conv_bn_relu_kernel(%arg0: i32, %arg1: memref<1x288x384xbf16, #tpu.memory_space<vmem>>, %arg2: memref<3x384x128xbf16, #tpu.memory_space<vmem>>, %arg3: memref<1x128xf32, #tpu.memory_space<vmem>>, %arg4: memref<1x128xf32, #tpu.memory_space<vmem>>, %arg5: memref<1x256x128xbf16, #tpu.memory_space<vmem>>) attributes {dimension_semantics = [#tpu.dimension_semantics<parallel>], iteration_bounds = array<i64: 2>, scalar_prefetch = 0 : i64, scratch_operands = 0 : i64, tpu.core_type = #tpu.core_type<tc>, window_params = [{transform_indices = @transform_0, window_bounds = array<i64: 1, 288, 384>}, {pipeline_mode = #tpu.pipeline_mode<synchronous>, transform_indices = @transform_1, window_bounds = array<i64: 3, 384, 128>}, {pipeline_mode = #tpu.pipeline_mode<synchronous>, transform_indices = @transform_2, window_bounds = array<i64: 1, 128>}, {pipeline_mode = #tpu.pipeline_mode<synchronous>, transform_indices = @transform_3, window_bounds = array<i64: 1, 128>}, {transform_indices = @transform_4, window_bounds = array<i64: 1, 256, 128>}]} {
    %c0 = arith.constant 0 : index
    %c0_0 = arith.constant 0 : index
    %c0_1 = arith.constant 0 : index
    %0 = vector.load %arg1[%c0, %c0_0, %c0_1] : memref<1x288x384xbf16, #tpu.memory_space<vmem>>, vector<1x256x384xbf16>
    %1 = vector.shape_cast %0 : vector<1x256x384xbf16> to vector<256x384xbf16>
    %c0_2 = arith.constant 0 : index
    %c0_3 = arith.constant 0 : index
    %c0_4 = arith.constant 0 : index
    %2 = vector.load %arg2[%c0_2, %c0_3, %c0_4] : memref<3x384x128xbf16, #tpu.memory_space<vmem>>, vector<1x384x128xbf16>
    %3 = vector.shape_cast %2 : vector<1x384x128xbf16> to vector<384x128xbf16>
    %cst = arith.constant dense<0.000000e+00> : vector<256x128xf32>
    %4 = tpu.matmul %1, %3, %cst {dimension_numbers = #tpu.dot_dimension_numbers<[1], [0], [0], [1], [0, 0, 1, 1], [], []>} : vector<256x384xbf16>, vector<384x128xbf16>, vector<256x128xf32> -> vector<256x128xf32>
    %c0_5 = arith.constant 0 : index
    %c16 = arith.constant 16 : index
    %c0_6 = arith.constant 0 : index
    %5 = vector.load %arg1[%c0_5, %c16, %c0_6] : memref<1x288x384xbf16, #tpu.memory_space<vmem>>, vector<1x256x384xbf16>
    %6 = vector.shape_cast %5 : vector<1x256x384xbf16> to vector<256x384xbf16>
    %c1 = arith.constant 1 : index
    %c0_7 = arith.constant 0 : index
    %c0_8 = arith.constant 0 : index
    %7 = vector.load %arg2[%c1, %c0_7, %c0_8] : memref<3x384x128xbf16, #tpu.memory_space<vmem>>, vector<1x384x128xbf16>
    %8 = vector.shape_cast %7 : vector<1x384x128xbf16> to vector<384x128xbf16>
    %cst_9 = arith.constant dense<0.000000e+00> : vector<256x128xf32>
    %9 = tpu.matmul %6, %8, %cst_9 {dimension_numbers = #tpu.dot_dimension_numbers<[1], [0], [0], [1], [0, 0, 1, 1], [], []>} : vector<256x384xbf16>, vector<384x128xbf16>, vector<256x128xf32> -> vector<256x128xf32>
    %10 = arith.addf %4, %9 : vector<256x128xf32>
    %c0_10 = arith.constant 0 : index
    %c32 = arith.constant 32 : index
    %c0_11 = arith.constant 0 : index
    %11 = vector.load %arg1[%c0_10, %c32, %c0_11] : memref<1x288x384xbf16, #tpu.memory_space<vmem>>, vector<1x256x384xbf16>
    %12 = vector.shape_cast %11 : vector<1x256x384xbf16> to vector<256x384xbf16>
    %c2 = arith.constant 2 : index
    %c0_12 = arith.constant 0 : index
    %c0_13 = arith.constant 0 : index
    %13 = vector.load %arg2[%c2, %c0_12, %c0_13] : memref<3x384x128xbf16, #tpu.memory_space<vmem>>, vector<1x384x128xbf16>
    %14 = vector.shape_cast %13 : vector<1x384x128xbf16> to vector<384x128xbf16>
    %cst_14 = arith.constant dense<0.000000e+00> : vector<256x128xf32>
    %15 = tpu.matmul %12, %14, %cst_14 {dimension_numbers = #tpu.dot_dimension_numbers<[1], [0], [0], [1], [0, 0, 1, 1], [], []>} : vector<256x384xbf16>, vector<384x128xbf16>, vector<256x128xf32> -> vector<256x128xf32>
    %16 = arith.addf %10, %15 : vector<256x128xf32>
    %c0_15 = arith.constant 0 : index
    %c0_16 = arith.constant 0 : index
    %17 = vector.load %arg3[%c0_15, %c0_16] : memref<1x128xf32, #tpu.memory_space<vmem>>, vector<1x128xf32>
    %18 = vector.broadcast %17 : vector<1x128xf32> to vector<256x128xf32>
    %19 = arith.mulf %16, %18 : vector<256x128xf32>
    %c0_17 = arith.constant 0 : index
    %c0_18 = arith.constant 0 : index
    %20 = vector.load %arg4[%c0_17, %c0_18] : memref<1x128xf32, #tpu.memory_space<vmem>>, vector<1x128xf32>
    %21 = vector.broadcast %20 : vector<1x128xf32> to vector<256x128xf32>
    %22 = arith.addf %19, %21 : vector<256x128xf32>
    %cst_19 = arith.constant 0.000000e+00 : f32
    %23 = vector.broadcast %cst_19 : f32 to vector<256x128xf32>
    %24 = arith.maximumf %22, %23 : vector<256x128xf32>
    %25 = arith.truncf %24 : vector<256x128xf32> to vector<256x128xbf16>
    %c0_20 = arith.constant 0 : index
    %c0_21 = arith.constant 0 : index
    %c0_22 = arith.constant 0 : index
    %26 = vector.load %arg5[%c0_20, %c0_21, %c0_22] : memref<1x256x128xbf16, #tpu.memory_space<vmem>>, vector<1x256x128xbf16>
    %27 = vector.shape_cast %26 : vector<1x256x128xbf16> to vector<256x128xbf16>
    %28 = vector.shape_cast %25 : vector<256x128xbf16> to vector<1x256x128xbf16>
    tpu.vector_store %arg5[%c0_20, %c0_21, %c0_22], %28 {strides = array<i32>} : memref<1x256x128xbf16, #tpu.memory_space<vmem>>, vector<1x256x128xbf16>,
    return
  }
  func.func @transform_0(%arg0: i32) -> (i32, i32, i32) {
    %c0_i32 = arith.constant 0 : i32
    %c0_i32_0 = arith.constant 0 : i32
    %c0_i32_1 = arith.constant 0 : i32
    return %arg0, %c0_i32, %c0_i32_0 : i32, i32, i32
  }
  func.func @transform_1(%arg0: i32) -> (i32, i32, i32) {
    %c0_i32 = arith.constant 0 : i32
    %c0_i32_0 = arith.constant 0 : i32
    %c0_i32_1 = arith.constant 0 : i32
    %c0_i32_2 = arith.constant 0 : i32
    return %c0_i32, %c0_i32_0, %c0_i32_1 : i32, i32, i32
  }
  func.func @transform_2(%arg0: i32) -> (i32, i32) {
    %c0_i32 = arith.constant 0 : i32
    %c0_i32_0 = arith.constant 0 : i32
    %c0_i32_1 = arith.constant 0 : i32
    return %c0_i32, %c0_i32_0 : i32, i32
  }
  func.func @transform_3(%arg0: i32) -> (i32, i32) {
    %c0_i32 = arith.constant 0 : i32
    %c0_i32_0 = arith.constant 0 : i32
    %c0_i32_1 = arith.constant 0 : i32
    return %c0_i32, %c0_i32_0 : i32, i32
  }
  func.func @transform_4(%arg0: i32) -> (i32, i32, i32) {
    %c0_i32 = arith.constant 0 : i32
    %c0_i32_0 = arith.constant 0 : i32
    %c0_i32_1 = arith.constant 0 : i32
    return %arg0, %c0_i32, %c0_i32_0 : i32, i32, i32
  }
}

</mosaic_0001>

<bundles_post_ra>
// kernel: tpu_custom_call.1
= control target key start
LH: loop header
LB: loop body
LE: loop exit
PB: predicated region body
PF: predicated region fallthrough
CT: control target
= control target key end

     0   :  { %9 = vsyncpa [#allocation3], 0  ;;  %s5167_s0 = inlined_call_operand.hbm [shape: bf16[2,288,384], index: 0, kind: input, shape index: {}]   ;;  %s5168_s1 = inlined_call_operand.hbm [shape: bf16[3,384,128], index: 1, kind: input, shape index: {}]   ;;  %s5169_s2 = inlined_call_operand.vmem [shape: f32[1,128], index: 2, kind: input, shape index: {}]   ;;  %s5170_s3 = inlined_call_operand.vmem [shape: f32[1,128], index: 3, kind: input, shape index: {}]   ;;  %s5171_s4 = inlined_call_operand.hbm [shape: bf16[2,256,128], index: 4, kind: output, shape index: {}]  }
   0x1   :  { %11 = vsyncpa [#allocation3 + $0x1], 0 }
   0x2   :  { %12 = vsyncpa [#allocation6], 0 }
   0x3   :  { %13 = vsyncpa [#allocation4], 0 }
   0x4   :  { %15 = vsyncpa [#allocation4 + $0x1], 0  ;;  %s4298_s15 = smov 0   ;;  %s4300_s16 = smov 0  }
   0x5   :  { %s4302_s17 = smov 0   ;;  %s4304_s18 = smov 0  }
   0x6 LB: > { %s4319_s19 = sadd.s32 4294967295, %s4262_s18   ;;  %s2835_s20 = sadd.s32 4294967294, %s4262_s18   ;;  %s4262_s18 = sphi %s4304_s18, %s5195_s18   ;;  %s4258_s17 = sphi %s4302_s17, %s5194_s17   ;;  %s4254_s16 = sphi %s4300_s16, %s5193_s16   ;;  %s4250_s15 = sphi %s4298_s15, %s5192_s15  }
   0x7   : > { %p41_p0 = scmp.ne.s32.totalorder %s4254_s16, %s4250_s15  ;;  %p5172_p1 = scmp.eq.s32.totalorder %s4319_s19, 0 }
   0x8   : > { %p134_p3 = scmp.eq.s32.totalorder %s2835_s20, 1  ;;  %p2836_p5 = scmp.ge.s32.totalorder %s4262_s18, 1 }
   0x9   : > { %p4328_p4 = por %p5172_p1, %p41_p0  ;;  %p141_p7 = scmp.lt.s32.totalorder %s4262_s18, 3 }
   0xa   : > { %p4333_p6 = por %p134_p3, %p41_p0  ;;  %s4264_s24 = smov [#allocation5]  }
   0xb   : > { %s5175_s21 = scalar_select %p4328_p4, 1, 0 }
   0xc   : > { %s5176_s22 = scalar_select %p4333_p6, 1, 0 }
   0xd   : > { %p4338_p8 = pnand %p2836_p5, %p141_p7  ;;  %s153_s25 = sshll.u32 %s4264_s24, 4  ;;  %s4342_s25 = int_to_ptr.vmem [resolvable:$true] %s153_s25 }
   0xe   : > { %s4354_s27 = sadd.s32 1, %s4262_s18   ;;  %s28_s28 = sadd.s32 1, %s4258_s17 }
   0xf   : > { %s5177_s23 = scalar_select %p4338_p8, 1, 0 }
  0x10   : > { %p3920_p9 = pneg %p4338_p8  ;;  %s25_s29 = ssub.s32 %s4262_s18, %s4354_s27 }
  0x11   : > { %s4134_s6 = scalar_lea.hbm %s5168_s1, 9216 }
  0x12   : > { %p4349_p11 = pnand %p3920_p9, %p5172_p1  ;;  %p4135_p12 = scmp.ne.s32.totalorder %s5168_s1, %s4134_s6 }
  0x13   : > { %p4141_p5 = scmp.lt.u32.totalorder %s4134_s6, %s5168_s1 }
  0x14   : > { %p4136_p13 = pneg %p4349_p11 }
  0x16   : > { %p4137_p0 = pnand %p4136_p13, %p4135_p12 }
  0x18   : > { %p4138_p3 = pneg %p4137_p0 }
  0x1a   : > { %p4143_p7 = pnand %p4141_p5, %p4138_p3 }
  0x1c   : > { %4146 = shalt.err (!%p4143_p7)
}
  0x1d   : > { %s4147_s11 = scalar_lea.vmem %s4342_s25, 9216  ;;  %p4155_p2 = scmp.lt.s32.totalorder %s4342_s25, %s4342_s25 }
  0x1e   : > { %p4148_p9 = scmp.ne.s32.totalorder %s4342_s25, %s4147_s11  ;;  %p4156_p6 = scmp.lt.s32.totalorder %s4147_s11, %s4147_s11 }
  0x20   : > { %p4150_p10 = pnand %p4148_p9, %p4136_p13  ;;  %p4157_p4 = por %p4156_p6, %p4155_p2 }
  0x22   : > { %p4151_p1 = pneg %p4150_p10 }
  0x24   : > { %p4158_p8 = pnand %p4157_p4, %p4151_p1 }
  0x26   : > { %4161 = shalt.err (!%p4158_p8)
}
  0x27   : > { %s4265_s12 = smov 64   ;;  %s4266_s13 = smov 4  }
  0x28   : > { %3923 = dma.hbm_to_vmem [thread:$0]  (!%p4349_p11), %s5168_s1, 9216, %s4342_s25, [#allocation6], %s4265_s12, %s4265_s12, %s4266_s13  }
  0x29   : > { %p26_p2 = scmp.eq.s32.totalorder %s25_s29, 0  ;;  %p35_p1 = scmp.ne.s32.totalorder %s4258_s17, %s4254_s16 }
  0x2a   : > { %p36_p4 = scmp.eq.s32.totalorder %s4262_s18, 0  ;;  %p3933_p6 = scmp.lt.s32.totalorder %s4262_s18, 2 }
  0x2b   : > { %s4385_s24 = scalar_select %p26_p2, %s4258_s17, %s28_s28  }
  0x2c   : > { %p37_p8 = por %p36_p4, %p35_p1  ;;  %p5179_p10 = scmp.eq.s32.totalorder %s4319_s19, 1 }
  0x2d   : > { %s173_s5 = sand.u32 1, %s4258_s17   ;;  %s3910_s6 = smul.u32 6912, %s4262_s18 }
  0x2e   : > { %p4389_p12 = por %p5179_p10, %p35_p1  ;;  %s3909_s7 = smul.u32 432, %s173_s5 }
  0x2f   : > { %s4398_s9 = scalar_lea.hbm %s5167_s0, %s3910_s6  ;;  %p4400_p11 = pnand %p3933_p6, %p37_p8 }
  0x30   : > { %s177_s28 = scalar_lea.vmem [#allocation2], %s3909_s7  ;;  %s4406_s10 = scalar_lea.sflag [#allocation3], %s173_s5 }
  0x31   : > { %s184_s29 = sshll.u32 %s177_s28, 4  ;;  %s4162_s11 = scalar_lea.hbm %s4398_s9, 6912  ;;  %s4404_s29 = int_to_ptr.vmem [resolvable:$true] %s184_s29 }
  0x32   : > { %p4163_p13 = scmp.ne.s32.totalorder %s4398_s9, %s4162_s11  ;;  %p4164_p0 = pneg %p4400_p11 }
  0x33   : > { %s4167_s14 = scalar_lea.hbm %s5167_s0, 13824  ;;  %p4168_p7 = scmp.lt.u32.totalorder %s4398_s9, %s5167_s0 }
  0x34   : > { %p4165_p3 = pnand %p4164_p0, %p4163_p13  ;;  %p4169_p9 = scmp.lt.u32.totalorder %s4167_s14, %s4162_s11 }
  0x35   : > { %p4171_p1 = scmp.lt.u32.totalorder %s4162_s11, %s4398_s9 }
  0x36   : > { %p4166_p5 = pneg %p4165_p3  ;;  %p4170_p2 = por %p4169_p9, %p4168_p7 }
  0x38   : > { %p4172_p4 = por %p4171_p1, %p4170_p2 }
  0x3a   : > { %p4173_p6 = pnand %p4172_p4, %p4166_p5 }
  0x3c   : > { %4176 = shalt.err (!%p4173_p6)
}
  0x3d   : > { %s4177_s5 = scalar_lea.vmem %s4404_s29, 6912  ;;  %s4267_s7 = smov [#allocation2]  }
  0x3e   : > { %p4178_p8 = scmp.ne.s32.totalorder %s4404_s29, %s4177_s5  ;;  %s4182_s26 = sshll.u32 %s4267_s7, 4  ;;  %s4183_s26 = int_to_ptr.vmem [resolvable:$false] %s4182_s26 }
  0x3f   : > { %s4184_s8 = scalar_lea.vmem %s4183_s26, 13824  ;;  %p4185_p3 = scmp.lt.s32.totalorder %s4404_s29, %s4183_s26 }
  0x40   : > { %p4180_p10 = pnand %p4178_p8, %p4164_p0  ;;  %p4186_p7 = scmp.lt.s32.totalorder %s4184_s8, %s4177_s5 }
  0x42   : > { %p4181_p13 = pneg %p4180_p10  ;;  %p4187_p9 = por %p4186_p7, %p4185_p3 }
  0x44   : > { %p4188_p2 = pnand %p4187_p9, %p4181_p13 }
  0x46   : > { %4191 = shalt.err (!%p4188_p2)
}
  0x47   : > { %s4268_s28 = smov 192   ;;  %s4269_s11 = smov 12  }
  0x48   : > { %3927 = dma.hbm_to_vmem [thread:$0]  (!%p4400_p11), %s4398_s9, 6912, %s4404_s29, %s4406_s10, %s4268_s28, %s4268_s28, %s4269_s11  }
  0x49   : > { %p5182_p0 = scmp.ne.s32.totalorder %s5177_s23, 0 }
  0x4b   : > { %196 = sbr.rel (%p5182_p0) target bundleno = 648 (0x288), region = 36 }
  0x52   : > { %s4437_s12 = sand.u32 1, %s4254_s16   ;;  %p5183_p5 = scmp.ne.s32.totalorder %s5175_s21, 0 }
  0x53   : > { %s3911_s13 = smul.u32 432, %s4437_s12  ;;  %s199_s14 = scalar_lea.sflag [#allocation3], %s4437_s12 }
  0x55   : > { %s4441_s20 = scalar_lea.vmem [#allocation2], %s3911_s13 }
  0x56   : > { %4237 = dma.done.wait (%p5183_p5), %s199_s14, 6912  }
  0x57   : > { %4239 = vsyncadd (%p5183_p5), %s199_s14, 4294960384  ;;  %p5184_p11 = scmp.eq.s32.totalorder %s4319_s19, 0 }
  0x59   : > { %4241 = dma.done.wait (%p5184_p11), [#allocation6], 9216   ;;  %p5185_p1 = pmov %p5184_p11 }
  0x5a   : > { %v3975_v0 = vld [vmem:[#allocation5 + $0x100] sm:$0xff]   ;;  %v3978_v3 = vld [vmem:[#allocation5 + $0x108] sm:$0xff]   ;;  %v3981_v6 = vld [vmem:[#allocation5 + $0x110] sm:$0xff]   ;;  %s2842_s29 = sshll.u32 %s4437_s12, 7  ;;  %s3085_s6 = sshll.u32 %s4319_s19, 11 }
  0x5b   : > { %4243 = vsyncadd (%p5185_p1), [#allocation6], 4294958080  ;;  %v4451_v1 = vld [vmem:[#allocation5 + $0x140] sm:$0xff]   ;;  %3181 = vmatprep.subr.bf16.mxu0 %v3975_v0  ;;  %v4455_v4 = vld [vmem:[#allocation5 + $0x148] sm:$0xff]   ;;  %s5008_s10 = scalar_lea.vmem [#allocation7], %s2842_s29  ;;  %s5120_s8 = scalar_lea.hbm %s5171_s4, %s3085_s6 }
  0x5c   : > { %v3977_v2 = vld [vmem:[#allocation5 + $0xc0] sm:$0xff]   ;;  %3733 = vmatprep.subr.bf16.mxu1 %v4451_v1  ;;  %v3980_v5 = vld [vmem:[#allocation5 + $0xc8] sm:$0xff]   ;;  %v4458_v7 = vld [vmem:[#allocation5 + $0x150] sm:$0xff]   ;;  %s2752_s5 = sshll.u32 %s5008_s10, 4  ;;  %s2739_s28 = scalar_lea.sflag [#allocation4], %s4437_s12  ;;  %s5122_s5 = int_to_ptr.vmem [resolvable:$true] %s2752_s5 }
  0x5d   : > { %3182 = vmatpush3.bf16.msra.mxu0 %v3977_v2  ;;  %3741 = vmatpush3.bf16.msra.mxu1 %v4451_v1  ;;  %v3983_v8 = vld [vmem:[#allocation5 + $0xd0] sm:$0xff]   ;;  %v3984_v9 = vld [vmem:[#allocation5 + $0x118] sm:$0xff]   ;;  %v3987_v12 = vld [vmem:[#allocation5 + $0x120] sm:$0xff]   ;;  %s4192_s11 = scalar_lea.vmem %s5122_s5, 2048  ;;  %s4270_s19 = smov [#allocation7]  }
  0x5e   : > { %3183 = vmatprep.subr.bf16.mxu0 %v3978_v3  ;;  %3734 = vmatprep.subr.bf16.mxu1 %v4455_v4  ;;  %v4462_v10 = vld [vmem:[#allocation5 + $0x158] sm:$0xff]   ;;  %v4466_v13 = vld [vmem:[#allocation5 + $0x160] sm:$0xff]   ;;  %v3990_v15 = vld [vmem:[#allocation5 + $0x128] sm:$0xff]   ;;  %p4193_p4 = scmp.ne.s32.totalorder %s5122_s5, %s4192_s11  ;;  %s4196_s13 = sshll.u32 %s4270_s19, 4  ;;  %s4197_s13 = int_to_ptr.vmem [resolvable:$false] %s4196_s13 }
  0x5f   : > { %v3986_v11 = vld [vmem:[#allocation5 + $0xd8] sm:$0xff]   ;;  %v3989_v14 = vld [vmem:[#allocation5 + $0xe0] sm:$0xff]   ;;  %v4470_v16 = vld [vmem:[#allocation5 + $0x168] sm:$0xff]   ;;  %s4198_s14 = scalar_lea.vmem %s4197_s13, 4096  ;;  %p4199_p10 = scmp.lt.s32.totalorder %s5122_s5, %s4197_s13 }
  0x60   : > { %v3992_v17 = vld [vmem:[#allocation5 + $0xe8] sm:$0xff]   ;;  %v3993_v18 = vld [vmem:[#allocation5 + $0x130] sm:$0xff]   ;;  %v3996_v21 = vld [vmem:[#allocation5 + $0x138] sm:$0xff]   ;;  %p4194_p6 = pnand %p4193_p4, %p4389_p12  ;;  %p4200_p13 = scmp.lt.s32.totalorder %s4198_s14, %s4192_s11 }
  0x61   : > { %3184 = vmatpush3.bf16.msra.mxu0 %v3980_v5  ;;  %3742 = vmatpush3.bf16.msra.mxu1 %v4455_v4  ;;  %v4474_v19 = vld [vmem:[#allocation5 + $0x170] sm:$0xff]   ;;  %v4477_v22 = vld [vmem:[#allocation5 + $0x178] sm:$0xff]   ;;  %v4004_v26 = vld [vmem:[#allocation5 + $0x40] sm:$0xff]  }
  0x62   : > { %3185 = vmatprep.subr.bf16.mxu0 %v3981_v6  ;;  %3735 = vmatprep.subr.bf16.mxu1 %v4458_v7  ;;  %v3995_v20 = vld [vmem:[#allocation5 + $0xf0] sm:$0xff]   ;;  %v4481_v23 = vld [vmem:[%s4441_s20 + $0x1c] ss:$12 sps:$4 sm:$0xff]   ;;  %v4005_v29 = vld [vmem:[#allocation5] sm:$0xff]   ;;  %p4195_p8 = pneg %p4194_p6  ;;  %p4201_p3 = por %p4200_p13, %p4199_p10 }
  0x63   : > { %v4484_v24 = vld [vmem:[%s4441_s20 + $0xe0] ss:$12 sps:$4 sm:$0xff]   ;;  %829 = vmatprep.mubr.bf16.mxu0 %v4481_v23  ;;  %v4490_v27 = vld [vmem:[%s4441_s20 + $0x18] ss:$12 sps:$4 sm:$0xff]   ;;  %v4502_v32 = vld [vmem:[%s4441_s20 + $0x110] ss:$12 sps:$4 sm:$0xff]  }
  0x64   : > { %v3998_v25 = vld [vmem:[#allocation5 + $0xf8] sm:$0xff]   ;;  %3621 = vmatprep.mubr.bf16.mxu1 %v4484_v24  ;;  %v4006_v30 = vld [vmem:[#allocation5 + $0x48] sm:$0xff]   ;;  %v4499_v31 = vld [vmem:[%s4441_s20 + $0x34] ss:$12 sps:$4 sm:$0xff]   ;;  %p4202_p7 = pnand %p4201_p3, %p4195_p8 }
  0x65   : > { %3186 = vmatpush3.bf16.msra.mxu0 %v3983_v8  ;;  %3743 = vmatpush3.bf16.msra.mxu1 %v4458_v7  ;;  %v4494_v28 = vld [vmem:[%s4441_s20 + $0xf8] ss:$12 sps:$4 sm:$0xff]   ;;  %v4509_v34 = vld [vmem:[%s4441_s20 + $0x30] ss:$12 sps:$4 sm:$0xff]   ;;  %v4513_v36 = vld [vmem:[%s4441_s20 + $0x128] ss:$12 sps:$4 sm:$0xff]  }
  0x66   : > { %3187 = vmatprep.subr.bf16.mxu0 %v3984_v9  ;;  %3736 = vmatprep.subr.bf16.mxu1 %v4462_v10  ;;  %v4007_v33 = vld [vmem:[#allocation5 + $0x8] sm:$0xff]   ;;  %v4013_v35 = vld [vmem:[#allocation5 + $0x50] sm:$0xff]   ;;  %v4015_v38 = vld [vmem:[#allocation5 + $0x58] sm:$0xff]  }
  0x67   : > { %v4014_v37 = vld [vmem:[#allocation5 + $0x10] sm:$0xff]   ;;  %v4517_v39 = vld [vmem:[%s4441_s20 + $0x4c] ss:$12 sps:$4 sm:$0xff]   ;;  %v4022_v44 = vld [vmem:[#allocation5 + $0x60] sm:$0xff]  }
  0x68   : > { %v4521_v40 = vld [vmem:[%s4441_s20 + $0x140] ss:$12 sps:$4 sm:$0xff]   ;;  %v4529_v42 = vld [vmem:[%s4441_s20 + $0x48] ss:$12 sps:$4 sm:$0xff]   ;;  %v4532_v43 = vld [vmem:[%s4441_s20 + $0x158] ss:$12 sps:$4 sm:$0xff]  }
  0x69   : > { %3188 = vmatpush3.bf16.msra.mxu0 %v3986_v11  ;;  %3744 = vmatpush3.bf16.msra.mxu1 %v4462_v10  ;;  %v4016_v41 = vld [vmem:[#allocation5 + $0x18] sm:$0xff]   ;;  %v4023_v45 = vld [vmem:[#allocation5 + $0x20] sm:$0xff]   ;;  %v4024_v46 = vld [vmem:[#allocation5 + $0x68] sm:$0xff]  }
  0x6a   : > { %3189 = vmatprep.subr.bf16.mxu0 %v3987_v12  ;;  %3737 = vmatprep.subr.bf16.mxu1 %v4466_v13  ;;  %v4537_v47 = vld [vmem:[%s4441_s20 + $0x64] ss:$12 sps:$4 sm:$0xff]   ;;  %v4025_v49 = vld [vmem:[#allocation5 + $0x28] sm:$0xff]   ;;  %v4033_v54 = vld [vmem:[#allocation5 + $0x78] sm:$0xff]  }
  0x6b   : > { %v4540_v48 = vld [vmem:[%s4441_s20 + $0x170] ss:$12 sps:$4 sm:$0xff]   ;;  %v4548_v51 = vld [vmem:[%s4441_s20 + $0x60] ss:$12 sps:$4 sm:$0xff]   ;;  %v4030_v52 = vld [vmem:[%s4441_s20 + $0x188] ss:$12 sps:$4 sm:$0xff]  }
  0x6c   : > { %v4031_v50 = vld [vmem:[#allocation5 + $0x70] sm:$0xff]   ;;  %v4554_v55 = vld [vmem:[%s4441_s20 + $0x7c] ss:$12 sps:$4 sm:$0xff]   ;;  %v4041_v58 = vld [vmem:[#allocation5 + $0x80] sm:$0xff]  }
  0x6d   : > { %3190 = vmatpush3.bf16.msra.mxu0 %v3989_v14  ;;  %3745 = vmatpush3.bf16.msra.mxu1 %v4466_v13  ;;  %v4032_v53 = vld [vmem:[#allocation5 + $0x30] sm:$0xff]   ;;  %v4034_v57 = vld [vmem:[#allocation5 + $0x38] sm:$0xff]   ;;  %v4048_v62 = vld [vmem:[#allocation5 + $0x88] sm:$0xff]  }
  0x6e   : > { %3191 = vmatprep.subr.bf16.mxu0 %v3990_v15  ;;  %3738 = vmatprep.subr.bf16.mxu1 %v4470_v16  ;;  %v4039_v56 = vld [vmem:[%s4441_s20 + $0x4] ss:$12 sps:$4 sm:$0xff]   ;;  %v4037_v59 = vld [vmem:[%s4441_s20] ss:$12 sps:$4 sm:$0xff]   ;;  %v4586_v3 = vld [vmem:[%s4441_s20 + $0xa8] ss:$12 sps:$4 sm:$0xff]  }
  0x6f   : > { %v4563_v60 = vld [vmem:[%s4441_s20 + $0x78] ss:$12 sps:$4 sm:$0xff]   ;;  %v4567_v61 = vld [vmem:[%s4441_s20 + $0x94] ss:$12 sps:$4 sm:$0xff]   ;;  %v4575_v0 = vld [vmem:[%s4441_s20 + $0x90] ss:$12 sps:$4 sm:$0xff]  }
  0x70   : > { %v4055_v63 = vld [vmem:[#allocation5 + $0x90] sm:$0xff]   ;;  %v4062_v2 = vld [vmem:[#allocation5 + $0x98] sm:$0xff]   ;;  %v4082_v5 = vld [vmem:[#allocation5 + $0x1c0] sm:$0xff]  }
  0x71   : > { %3192 = vmatpush3.bf16.msra.mxu0 %v3992_v17  ;;  %3746 = vmatpush3.bf16.msra.mxu1 %v4470_v16  ;;  %v4589_v6 = vld [vmem:[%s4441_s20 + $0xc4] ss:$12 sps:$4 sm:$0xff]   ;;  %v4596_v9 = vld [vmem:[%s4441_s20 + $0xc0] ss:$12 sps:$4 sm:$0xff]   ;;  %v4629_v17 = vld [vmem:[%s4441_s20 + $0x108] ss:$12 sps:$4 sm:$0xff]  }
  0x72   : > { %3193 = vmatprep.subr.bf16.mxu0 %v3993_v18  ;;  %3739 = vmatprep.subr.bf16.mxu1 %v4474_v19  ;;  %v4084_v8 = vld [vmem:[#allocation5 + $0xb0] sm:$0xff]   ;;  %v4097_v11 = vld [vmem:[#allocation5 + $0xb8] sm:$0xff]  }
  0x73   : > { %v4606_v12 = vld [vmem:[%s4441_s20 + $0xd8] ss:$12 sps:$4 sm:$0xff]   ;;  %v4616_v14 = vld [vmem:[%s4441_s20 + $0xf0] ss:$12 sps:$4 sm:$0xff]  }
  0x74   : > { %v4619_v15 = vld [vmem:[%s4441_s20 + $0x10c] ss:$12 sps:$4 sm:$0xff]   ;;  %v4632_v18 = vld [vmem:[%s4441_s20 + $0x124] ss:$12 sps:$4 sm:$0xff]  }
  0x75   : > { %3194 = vmatpush3.bf16.msra.mxu0 %v3995_v20  ;;  %3747 = vmatpush3.bf16.msra.mxu1 %v4474_v19  ;;  %v4642_v20 = vld [vmem:[%s4441_s20 + $0x13c] ss:$12 sps:$4 sm:$0xff]  }
  0x76   : > { %3195 = vmatprep.subr.bf16.mxu0 %v3996_v21  ;;  %3740 = vmatprep.subr.bf16.mxu1 %v4477_v22  ;;  %v4649_v21 = vld [vmem:[%s4441_s20 + $0x138] ss:$12 sps:$4 sm:$0xff]  }
  0x79   : > { %3196 = vmatpush3.bf16.msra.mxu0 %v3998_v25  ;;  %3748 = vmatpush3.bf16.msra.mxu1 %v4477_v22  ;;  %v4662_v25 = vld [vmem:[%s4441_s20 + $0x16c] ss:$12 sps:$4 sm:$0xff]  }
  0x7a   : > { %3589 = vmatprep.subr.bf16.mxu0 %v4451_v1  ;;  %3317 = vmatprep.subr.bf16.mxu1 %v4004_v26  ;;  %v4669_v26 = vld [vmem:[%s4441_s20 + $0x168] ss:$12 sps:$4 sm:$0xff]  }
  0x7c   : > { %830 = vmatmul.mubr.bf16.vlgmr.msra.gmra.mrb[0].mxu0 %v4490_v27  ;;  %3622 = vmatmul.mubr.bf16.vlgmr.msra.gmra.mrb[0].mxu1 %v4494_v28 }
  0x7d   : > { %3590 = vmatpush3.bf16.msra.mxu0 %v4451_v1  ;;  %3318 = vmatpush3.bf16.msra.mxu1 %v4005_v29  ;;  %v4579_v1 = vld [vmem:[%s4441_s20 + $0xac] ss:$12 sps:$4 sm:$0xff]  }
  0x7e   : > { %3319 = vmatprep.subr.bf16.mxu1 %v4006_v30  ;;  %837 = vmatprep.mubr.bf16.mxu0 %v4499_v31  ;;  %v4679_v29 = vld [vmem:[%s4441_s20 + $0x180] ss:$12 sps:$4 sm:$0xff]  }
  0x7f   : > { %3625 = vmatprep.mubr.bf16.mxu1 %v4502_v32  ;;  %3591 = vmatprep.subr.bf16.mxu0 %v4455_v4  ;;  %v4080_v30 = vld [vmem:[%s4441_s20 + $0x20] ss:$12 sps:$4 sm:$0xff]  }
  0x81   : > { %3320 = vmatpush3.bf16.msra.mxu1 %v4007_v33  ;;  %3592 = vmatpush3.bf16.msra.mxu0 %v4455_v4  ;;  %v4069_v4 = vld [vmem:[#allocation5 + $0xa0] sm:$0xff]  }
  0x82   : > { %3321 = vmatprep.subr.bf16.mxu1 %v4013_v35  ;;  %3593 = vmatprep.subr.bf16.mxu0 %v4458_v7  ;;  %v4081_v33 = vld [vmem:[%s4441_s20 + $0x38] ss:$12 sps:$4 sm:$0xff]  }
  0x83   : > { %v4083_v35 = vld [vmem:[#allocation5 + $0x180] sm:$0xff]  }
  0x84   : > { %838 = vmatmul.mubr.bf16.gmra.mrb[4].mxu0 %v4509_v34  ;;  %3626 = vmatmul.mubr.bf16.gmra.mrb[4].mxu1 %v4513_v36 }
  0x85   : > { %3322 = vmatpush3.bf16.msra.mxu1 %v4014_v37  ;;  %845 = vmatprep.mubr.bf16.mxu0 %v4517_v39  ;;  %v4087_v37 = vld [vmem:[%s4441_s20 + $0x50] ss:$12 sps:$4 sm:$0xff]  }
  0x86   : > { %3323 = vmatprep.subr.bf16.mxu1 %v4015_v38  ;;  %3629 = vmatprep.mubr.bf16.mxu1 %v4521_v40  ;;  %v4085_v38 = vld [vmem:[#allocation5 + $0x1c8] sm:$0xff]  }
  0x87   : > { %3594 = vmatpush3.bf16.msra.mxu0 %v4458_v7  ;;  %v4076_v7 = vld [vmem:[#allocation5 + $0xa8] sm:$0xff]  }
  0x88   : > { %3595 = vmatprep.subr.bf16.mxu0 %v4462_v10 }
  0x89   : > { %3324 = vmatpush3.bf16.msra.mxu1 %v4016_v41  ;;  %v4086_v41 = vld [vmem:[#allocation5 + $0x188] sm:$0xff]  }
  0x8a   : > { %3325 = vmatprep.subr.bf16.mxu1 %v4022_v44  ;;  %v4089_v44 = vld [vmem:[#allocation5 + $0x1d0] sm:$0xff]  }
  0x8b   : > { %3596 = vmatpush3.bf16.msra.mxu0 %v4462_v10  ;;  %v4599_v10 = vld [vmem:[%s4441_s20 + $0xdc] ss:$12 sps:$4 sm:$0xff]  }
  0x8c   : > { %846 = vmatmul.mubr.bf16.gmra.mrb[8].mxu0 %v4529_v42  ;;  %3630 = vmatmul.mubr.bf16.gmra.mrb[8].mxu1 %v4532_v43 }
  0x8d   : > { %3326 = vmatpush3.bf16.msra.mxu1 %v4023_v45  ;;  %853 = vmatprep.mubr.bf16.mxu0 %v4537_v47  ;;  %v4088_v45 = vld [vmem:[%s4441_s20 + $0x68] ss:$12 sps:$4 sm:$0xff]  }
  0x8e   : > { %3327 = vmatprep.subr.bf16.mxu1 %v4024_v46  ;;  %3633 = vmatprep.mubr.bf16.mxu1 %v4540_v48  ;;  %v4090_v46 = vld [vmem:[#allocation5 + $0x190] sm:$0xff]  }
  0x8f   : > { %3597 = vmatprep.subr.bf16.mxu0 %v4466_v13 }
  0x90   : > { %3598 = vmatpush3.bf16.msra.mxu0 %v4466_v13  ;;  %v4609_v13 = vld [vmem:[%s4441_s20 + $0xf4] ss:$12 sps:$4 sm:$0xff]  }
  0x91   : > { %3328 = vmatpush3.bf16.msra.mxu1 %v4025_v49  ;;  %3599 = vmatprep.subr.bf16.mxu0 %v4470_v16  ;;  %v4093_v49 = vld [vmem:[%s4441_s20 + $0x80] ss:$12 sps:$4 sm:$0xff]  }
  0x92   : > { %3329 = vmatprep.subr.bf16.mxu1 %v4031_v50  ;;  %v4091_v50 = vld [vmem:[#allocation5 + $0x1d8] sm:$0xff]  }
  0x94   : > { %854 = vmatmul.mubr.bf16.gmra.mrb[12].mxu0 %v4548_v51  ;;  %3634 = vmatmul.mubr.bf16.gmra.mrb[12].mxu1 %v4030_v52  ;;  %v4092_v52 = vld [vmem:[#allocation5 + $0x198] sm:$0xff]  }
  0x95   : > { %3330 = vmatpush3.bf16.msra.mxu1 %v4032_v53  ;;  %861 = vmatprep.mubr.bf16.mxu0 %v4554_v55  ;;  %v4095_v53 = vld [vmem:[#allocation5 + $0x1e0] sm:$0xff]  }
  0x96   : > { %3331 = vmatprep.subr.bf16.mxu1 %v4033_v54  ;;  %1311 = vmatprep.mubr.bf16.mxu1 %v4039_v56  ;;  %v4094_v54 = vld [vmem:[%s4441_s20 + $0x98] ss:$12 sps:$4 sm:$0xff]  }
  0x97   : > { %3600 = vmatpush3.bf16.msra.mxu0 %v4470_v16  ;;  %v4621_v16 = vld [vmem:[#allocation5 + $0x200] sm:$0xff]  }
  0x98   : > { %3601 = vmatprep.subr.bf16.mxu0 %v4474_v19  ;;  %v4096_v56 = vld [vmem:[#allocation5 + $0x1a0] sm:$0xff]  }
  0x99   : > { %3332 = vmatpush3.bf16.msra.mxu1 %v4034_v57  ;;  %v4100_v57 = vld [vmem:[%s4441_s20 + $0xb0] ss:$12 sps:$4 sm:$0xff]  }
  0x9a   : > { %3637 = vmatprep.subr.bf16.mxu1 %v4041_v58 }
  0x9b   : > { %3602 = vmatpush3.bf16.msra.mxu0 %v4474_v19  ;;  %v4639_v19 = vld [vmem:[%s4441_s20 + $0x120] ss:$12 sps:$4 sm:$0xff]  }
  0x9c   : > { %862 = vmatmul.mubr.bf16.gmra.mrb[16].mxu0 %v4563_v60  ;;  %1312 = vmatmul.mubr.bf16.vlgmr.msra.gmra.mrb[16].mxu1 %v4037_v59  ;;  %v4099_v59 = vld [vmem:[#allocation5 + $0x1a8] sm:$0xff]  }
  0x9d   : > { %3638 = vmatpush3.bf16.msra.mxu1 %v4041_v58  ;;  %869 = vmatprep.mubr.bf16.mxu0 %v4567_v61  ;;  %v4098_v58 = vld [vmem:[#allocation5 + $0x1e8] sm:$0xff]  }
  0x9e   : > { %1319 = vmatprep.mubr.bf16.mxu1 %v4481_v23  ;;  %3639 = vmatprep.subr.bf16.mxu1 %v4048_v62  ;;  %v4659_v23 = vld [vmem:[%s4441_s20 + $0x150] ss:$12 sps:$4 sm:$0xff]  }
  0x9f   : > { %3603 = vmatprep.subr.bf16.mxu0 %v4477_v22 }
  0xa0   : > { %3604 = vmatpush3.bf16.msra.mxu0 %v4477_v22  ;;  %v4652_v22 = vld [vmem:[%s4441_s20 + $0x154] ss:$12 sps:$4 sm:$0xff]  }
  0xa1   : > { %3640 = vmatpush3.bf16.msra.mxu1 %v4048_v62  ;;  %3453 = vmatprep.subr.bf16.mxu0 %v4082_v5  ;;  %v4102_v62 = vld [vmem:[#allocation5 + $0x1f0] sm:$0xff]   ;;  %v4104_v5 = vld [vmem:[#allocation5 + $0x1f8] sm:$0xff]  }
  0xa2   : > { %3641 = vmatprep.subr.bf16.mxu1 %v4055_v63 }
  0xa4   : > { %870 = vmatmul.mubr.bf16.gmra.mrb[20].mxu0 %v4575_v0  ;;  %1320 = vmatmul.mubr.bf16.gmra.mrb[20].mxu1 %v4490_v27  ;;  %v4672_v27 = vld [vmem:[%s4441_s20 + $0x184] ss:$12 sps:$4 sm:$0xff]  }
  0xa5   : > { %877 = vmatprep.mubr.bf16.mxu0 %v4579_v1  ;;  %1327 = vmatprep.mubr.bf16.mxu1 %v4499_v31 }
  0xa6   : > { %3642 = vmatpush3.bf16.msra.mxu1 %v4055_v63  ;;  %v4101_v63 = vld [vmem:[%s4441_s20 + $0xc8] ss:$12 sps:$4 sm:$0xff]  }
  0xa7   : > { %3643 = vmatprep.subr.bf16.mxu1 %v4062_v2 }
  0xaa   : > { %3644 = vmatpush3.bf16.msra.mxu1 %v4062_v2  ;;  %v4103_v2 = vld [vmem:[#allocation5 + $0x1b0] sm:$0xff]  }
  0xab   : > { %3645 = vmatprep.subr.bf16.mxu1 %v4069_v4 }
  0xac   : > { %878 = vmatmul.mubr.bf16.gmra.mrb[24].mxu0 %v4586_v3  ;;  %1328 = vmatmul.mubr.bf16.gmra.mrb[24].mxu1 %v4509_v34 }
  0xad   : > { %885 = vmatprep.mubr.bf16.mxu0 %v4589_v6  ;;  %1335 = vmatprep.mubr.bf16.mxu1 %v4517_v39 }
  0xae   : > { %3646 = vmatpush3.bf16.msra.mxu1 %v4069_v4  ;;  %v4106_v4 = vld [vmem:[%s4441_s20 + $0x8] ss:$12 sps:$4 sm:$0xff]  }
  0xaf   : > { %3647 = vmatprep.subr.bf16.mxu1 %v4076_v7 }
  0xb2   : > { %3648 = vmatpush3.bf16.msra.mxu1 %v4076_v7  ;;  %v4105_v7 = vld [vmem:[#allocation5 + $0x1b8] sm:$0xff]  }
  0xb3   : > { %3649 = vmatprep.subr.bf16.mxu1 %v4084_v8 }
  0xb4   : > { %886 = vmatmul.mubr.bf16.gmra.mrb[28].mxu0 %v4596_v9  ;;  %1336 = vmatmul.mubr.bf16.gmra.mrb[28].mxu1 %v4529_v42 }
  0xb5   : > { %893 = vmatprep.mubr.bf16.mxu0 %v4599_v10  ;;  %1343 = vmatprep.mubr.bf16.mxu1 %v4537_v47 }
  0xb6   : > { %3650 = vmatpush3.bf16.msra.mxu1 %v4084_v8  ;;  %v4108_v8 = vld [vmem:[#allocation5 + $0x208] sm:$0xff]  }
  0xb7   : > { %3651 = vmatprep.subr.bf16.mxu1 %v4097_v11 }
  0xba   : > { %3652 = vmatpush3.bf16.msra.mxu1 %v4097_v11  ;;  %v4109_v11 = vld [vmem:[#allocation5 + $0x210] sm:$0xff]  }
  0xbb   : > { %3685 = vmatprep.subr.bf16.mxu1 %v4621_v16 }
  0xbc   : > { %894 = vmatmul.mubr.bf16.gmra.mrb[32].mxu0 %v4606_v12  ;;  %1344 = vmatmul.mubr.bf16.gmra.mrb[32].mxu1 %v4548_v51 }
  0xbd   : > { %901 = vmatprep.mubr.bf16.mxu0 %v4609_v13  ;;  %1351 = vmatprep.mubr.bf16.mxu1 %v4554_v55 }
  0xc4   : > { %902 = vmatmul.mubr.bf16.gmra.mrb[36].mxu0 %v4616_v14  ;;  %1352 = vmatmul.mubr.bf16.gmra.mrb[36].mxu1 %v4563_v60 }
  0xc5   : > { %909 = vmatprep.mubr.bf16.mxu0 %v4619_v15  ;;  %1359 = vmatprep.mubr.bf16.mxu1 %v4567_v61 }
  0xcc   : > { %910 = vmatmul.mubr.bf16.gmra.mrb[40].mxu0 %v4629_v17  ;;  %1360 = vmatmul.mubr.bf16.gmra.mrb[40].mxu1 %v4575_v0 }
  0xcd   : > { %917 = vmatprep.mubr.bf16.mxu0 %v4632_v18  ;;  %1367 = vmatprep.mubr.bf16.mxu1 %v4579_v1 }
  0xd4   : > { %918 = vmatmul.mubr.bf16.gmra.mrb[44].mxu0 %v4639_v19  ;;  %1368 = vmatmul.mubr.bf16.gmra.mrb[44].mxu1 %v4586_v3 }
  0xd5   : > { %925 = vmatprep.mubr.bf16.mxu0 %v4642_v20  ;;  %1375 = vmatprep.mubr.bf16.mxu1 %v4589_v6 }
  0xdc   : > { %926 = vmatmul.mubr.bf16.gmra.mrb[48].mxu0 %v4649_v21  ;;  %1376 = vmatmul.mubr.bf16.gmra.mrb[48].mxu1 %v4596_v9 }
  0xdd   : > { %933 = vmatprep.mubr.bf16.mxu0 %v4652_v22  ;;  %1383 = vmatprep.mubr.bf16.mxu1 %v4599_v10 }
  0xe4   : > { %934 = vmatmul.mubr.bf16.gmra.mrb[52].mxu0 %v4659_v23  ;;  %1384 = vmatmul.mubr.bf16.gmra.mrb[52].mxu1 %v4606_v12 }
  0xe5   : > { %941 = vmatprep.mubr.bf16.mxu0 %v4662_v25  ;;  %1391 = vmatprep.mubr.bf16.mxu1 %v4609_v13 }
  0xec   : > { %942 = vmatmul.mubr.bf16.gmra.mrb[56].mxu0 %v4669_v26  ;;  %1392 = vmatmul.mubr.bf16.gmra.mrb[56].mxu1 %v4616_v14 }
  0xed   : > { %949 = vmatprep.mubr.bf16.mxu0 %v4672_v27  ;;  %1399 = vmatprep.mubr.bf16.mxu1 %v4619_v15 }
  0xf4   : > { %950 = vmatmul.mubr.bf16.gmra.mrb[60].mxu0 %v4679_v29  ;;  %1400 = vmatmul.mubr.bf16.gmra.mrb[60].mxu1 %v4629_v17 }
  0xf5   : > { %3605 = vmatprep.mubr.bf16.mxu0 %v4080_v30  ;;  %1407 = vmatprep.mubr.bf16.mxu1 %v4632_v18 }
  0xfc   : > { %3606 = vmatmul.mubr.bf16.vlgmr.msra.gmra.mrb[64].mxu0 %v4081_v33  ;;  %1408 = vmatmul.mubr.bf16.gmra.mrb[64].mxu1 %v4639_v19 }
  0xfd   : > { %3454 = vmatpush3.bf16.msra.mxu0 %v4083_v35  ;;  %3609 = vmatprep.mubr.bf16.mxu0 %v4087_v37  ;;  %v4110_v35 = vld [vmem:[#allocation5 + $0x218] sm:$0xff]  }
  0xfe   : > { %3455 = vmatprep.subr.bf16.mxu0 %v4085_v38  ;;  %1415 = vmatprep.mubr.bf16.mxu1 %v4642_v20 }
 0x101   : > { %3456 = vmatpush3.bf16.msra.mxu0 %v4086_v41 }
 0x102   : > { %3457 = vmatprep.subr.bf16.mxu0 %v4089_v44  ;;  %v4121_v44 = vld [vmem:[%s4441_s20 + $0xc8] ss:$12 sps:$4 sm:$0xff]  }
 0x104   : > { %3610 = vmatmul.mubr.bf16.gmra.mrb[68].mxu0 %v4088_v45  ;;  %1416 = vmatmul.mubr.bf16.gmra.mrb[68].mxu1 %v4649_v21 }
 0x105   : > { %3458 = vmatpush3.bf16.msra.mxu0 %v4090_v46  ;;  %3613 = vmatprep.mubr.bf16.mxu0 %v4093_v49 }
 0x106   : > { %3459 = vmatprep.subr.bf16.mxu0 %v4091_v50  ;;  %1423 = vmatprep.mubr.bf16.mxu1 %v4652_v22 }
 0x109   : > { %3460 = vmatpush3.bf16.msra.mxu0 %v4092_v52  ;;  %v4122_v52 = vld [vmem:[%s4441_s20 + $0xe0] ss:$12 sps:$4 sm:$0xff]  }
 0x10a   : > { %3461 = vmatprep.subr.bf16.mxu0 %v4095_v53 }
 0x10c   : > { %3614 = vmatmul.mubr.bf16.gmra.mrb[72].mxu0 %v4094_v54  ;;  %1424 = vmatmul.mubr.bf16.gmra.mrb[72].mxu1 %v4659_v23 }
 0x10d   : > { %3462 = vmatpush3.bf16.msra.mxu0 %v4096_v56  ;;  %3617 = vmatprep.mubr.bf16.mxu0 %v4100_v57 }
 0x10e   : > { %3463 = vmatprep.subr.bf16.mxu0 %v4098_v58  ;;  %1431 = vmatprep.mubr.bf16.mxu1 %v4662_v25  ;;  %v4123_v58 = vld [vmem:[%s4441_s20 + $0xf8] ss:$12 sps:$4 sm:$0xff]  }
 0x111   : > { %3464 = vmatpush3.bf16.msra.mxu0 %v4099_v59 }
 0x112   : > { %3465 = vmatprep.subr.bf16.mxu0 %v4102_v62 }
 0x114   : > { %3618 = vmatmul.mubr.bf16.gmra.mrb[76].mxu0 %v4101_v63  ;;  %1432 = vmatmul.mubr.bf16.gmra.mrb[76].mxu1 %v4669_v26 }
 0x115   : > { %3466 = vmatpush3.bf16.msra.mxu0 %v4103_v2  ;;  %3653 = vmatprep.mubr.bf16.mxu1 %v4106_v4 }
 0x116   : > { %3467 = vmatprep.subr.bf16.mxu0 %v4104_v5  ;;  %2146 = vmatprep.mubr.bf16.mxu0 %v4499_v31  ;;  %v4111_v31 = vld [vmem:[#allocation5 + $0x220] sm:$0xff]  }
 0x119   : > { %3468 = vmatpush3.bf16.msra.mxu0 %v4105_v7  ;;  %v4124_v7 = vld [vmem:[%s4441_s20 + $0x110] ss:$12 sps:$4 sm:$0xff]  }
 0x11c   : > { %3654 = vmatmul.mubr.bf16.vlgmr.msra.gmra.mrb[80].mxu1 %v4080_v30  ;;  %2147 = vmatmul.mubr.bf16.vlgmr.msra.gmra.mrb[80].mxu0 %v4509_v34  ;;  %v4112_v34 = vld [vmem:[#allocation5 + $0x228] sm:$0xff]  }
 0x11d   : > { %3686 = vmatpush3.bf16.msra.mxu1 %v4621_v16  ;;  %3657 = vmatprep.mubr.bf16.mxu1 %v4081_v33  ;;  %v4119_v16 = vld [vmem:[%s4441_s20 + $0x98] ss:$12 sps:$4 sm:$0xff]  }
 0x11e   : > { %2154 = vmatprep.mubr.bf16.mxu0 %v4517_v39  ;;  %3687 = vmatprep.subr.bf16.mxu1 %v4108_v8  ;;  %v4113_v39 = vld [vmem:[#allocation5 + $0x230] sm:$0xff]  }
 0x121   : > { %3688 = vmatpush3.bf16.msra.mxu1 %v4108_v8 }
 0x122   : > { %3689 = vmatprep.subr.bf16.mxu1 %v4109_v11 }
 0x124   : > { %3658 = vmatmul.mubr.bf16.gmra.mrb[84].mxu1 %v4087_v37  ;;  %2155 = vmatmul.mubr.bf16.gmra.mrb[84].mxu0 %v4529_v42  ;;  %v4114_v42 = vld [vmem:[#allocation5 + $0x238] sm:$0xff]  }
 0x125   : > { %3661 = vmatprep.mubr.bf16.mxu1 %v4088_v45  ;;  %2162 = vmatprep.mubr.bf16.mxu0 %v4537_v47  ;;  %v4120_v37 = vld [vmem:[%s4441_s20 + $0xb0] ss:$12 sps:$4 sm:$0xff]  }
 0x126   : > { %3690 = vmatpush3.bf16.msra.mxu1 %v4109_v11 }
 0x127   : > { %3691 = vmatprep.subr.bf16.mxu1 %v4110_v35 }
 0x12a   : > { %3692 = vmatpush3.bf16.msra.mxu1 %v4110_v35 }
 0x12b   : > { %3693 = vmatprep.subr.bf16.mxu1 %v4111_v31 }
 0x12c   : > { %3662 = vmatmul.mubr.bf16.gmra.mrb[88].mxu1 %v4093_v49  ;;  %2163 = vmatmul.mubr.bf16.gmra.mrb[88].mxu0 %v4548_v51  ;;  %v4115_v51 = vld [vmem:[%s4441_s20 + $0x38] ss:$12 sps:$4 sm:$0xff]  }
 0x12d   : > { %3665 = vmatprep.mubr.bf16.mxu1 %v4094_v54  ;;  %2170 = vmatprep.mubr.bf16.mxu0 %v4554_v55 }
 0x12e   : > { %3694 = vmatpush3.bf16.msra.mxu1 %v4111_v31 }
 0x12f   : > { %3695 = vmatprep.subr.bf16.mxu1 %v4112_v34 }
 0x132   : > { %3696 = vmatpush3.bf16.msra.mxu1 %v4112_v34  ;;  %v4125_v34 = vld [vmem:[%s4441_s20 + $0x128] ss:$12 sps:$4 sm:$0xff]  }
 0x133   : > { %3697 = vmatprep.subr.bf16.mxu1 %v4113_v39 }
 0x134   : > { %3666 = vmatmul.mubr.bf16.gmra.mrb[92].mxu1 %v4100_v57  ;;  %2171 = vmatmul.mubr.bf16.gmra.mrb[92].mxu0 %v4563_v60  ;;  %v4116_v60 = vld [vmem:[%s4441_s20 + $0x50] ss:$12 sps:$4 sm:$0xff]  }
 0x135   : > { %3669 = vmatprep.mubr.bf16.mxu1 %v4101_v63  ;;  %2178 = vmatprep.mubr.bf16.mxu0 %v4567_v61 }
 0x136   : > { %3698 = vmatpush3.bf16.msra.mxu1 %v4113_v39 }
 0x137   : > { %3699 = vmatprep.subr.bf16.mxu1 %v4114_v42 }
 0x13a   : > { %3700 = vmatpush3.bf16.msra.mxu1 %v4114_v42 }
 0x13c   : > { %3670 = vmatmul.mubr.bf16.gmra.mrb[0].mxu1 %v4484_v24  ;;  %2179 = vmatmul.mubr.bf16.gmra.mrb[96].mxu0 %v4575_v0 }
 0x13d   : > { %3673 = vmatprep.mubr.bf16.mxu1 %v4494_v28  ;;  %2186 = vmatprep.mubr.bf16.mxu0 %v4579_v1  ;;  %v4117_v1 = vld [vmem:[%s4441_s20 + $0x68] ss:$12 sps:$4 sm:$0xff]  }
 0x144   : > { %3674 = vmatmul.mubr.bf16.gmra.mrb[4].mxu1 %v4502_v32  ;;  %2187 = vmatmul.mubr.bf16.gmra.mrb[100].mxu0 %v4586_v3 }
 0x145   : > { %3677 = vmatprep.mubr.bf16.mxu1 %v4513_v36  ;;  %2194 = vmatprep.mubr.bf16.mxu0 %v4589_v6 }
 0x14c   : > { %3678 = vmatmul.mubr.bf16.gmra.mrb[8].mxu1 %v4521_v40  ;;  %2195 = vmatmul.mubr.bf16.gmra.mrb[104].mxu0 %v4596_v9 }
 0x14d   : > { %3681 = vmatprep.mubr.bf16.mxu1 %v4532_v43  ;;  %2202 = vmatprep.mubr.bf16.mxu0 %v4599_v10  ;;  %v4118_v10 = vld [vmem:[%s4441_s20 + $0x80] ss:$12 sps:$4 sm:$0xff]  }
 0x14f   : > { %v3197_v24 = vpop.f32.mrb[0].mxu0 }
 0x150   : > { %v3198_v28 = vpop.f32.mrb[1].mxu0 }
 0x151   : > { %v4722_v47 = vadd.f32 %v3198_v28, %v3197_v24  ;;  %v3200_v32 = vpop.f32.mrb[2].mxu0 }
 0x152   : > { %v3201_v55 = vpop.f32.mrb[3].mxu0 }
 0x153   : > { %v4725_v36 = vadd.f32 %v3201_v55, %v3200_v32  ;;  %v4126_v55 = vld [vmem:[%s4441_s20 + $0x140] ss:$12 sps:$4 sm:$0xff]  }
 0x154   : > { %3682 = vmatmul.mubr.bf16.gmra.mrb[12].mxu1 %v4540_v48  ;;  %2203 = vmatmul.mubr.bf16.gmra.mrb[108].mxu0 %v4606_v12 }
 0x155   : > { %2210 = vmatprep.mubr.bf16.mxu0 %v4609_v13  ;;  %3701 = vmatprep.mubr.bf16.mxu1 %v4115_v51 }
 0x157   : > { %v3203_v40 = vpop.f32.mrb[4].mxu0 }
 0x158   : > { %v3204_v43 = vpop.f32.mrb[5].mxu0 }
 0x159   : > { %v4731_v61 = vadd.f32 %v3204_v43, %v3203_v40  ;;  %v3206_v0 = vpop.f32.mrb[6].mxu0 }
 0x15a   : > { %v3207_v3 = vpop.f32.mrb[7].mxu0 }
 0x15b   : > { %v4734_v6 = vadd.f32 %v3207_v3, %v3206_v0 }
 0x15c   : > { %2211 = vmatmul.mubr.bf16.gmra.mrb[112].mxu0 %v4616_v14  ;;  %3702 = vmatmul.mubr.bf16.vlgmr.msra.gmra.mrb[80].mxu1 %v4116_v60 }
 0x15d   : > { %2218 = vmatprep.mubr.bf16.mxu0 %v4619_v15  ;;  %3705 = vmatprep.mubr.bf16.mxu1 %v4117_v1  ;;  %v4127_v1 = vld [vmem:[%s4441_s20 + $0x158] ss:$12 sps:$4 sm:$0xff]  }
 0x15f   : > { %v3209_v48 = vpop.f32.mrb[8].mxu0 }
 0x160   : > { %v3210_v9 = vpop.f32.mrb[9].mxu0 }
 0x161   : > { %v4739_v12 = vadd.f32 %v3210_v9, %v3209_v48  ;;  %v3212_v13 = vpop.f32.mrb[10].mxu0 }
 0x162   : > { %v3213_v30 = vpop.f32.mrb[11].mxu0 }
 0x163   : > { %v4742_v33 = vadd.f32 %v3213_v30, %v3212_v13  ;;  %v4128_v30 = vld [vmem:[%s4441_s20 + $0x170] ss:$12 sps:$4 sm:$0xff]  }
 0x164   : > { %2219 = vmatmul.mubr.bf16.gmra.mrb[116].mxu0 %v4629_v17  ;;  %3706 = vmatmul.mubr.bf16.gmra.mrb[84].mxu1 %v4118_v10 }
 0x165   : > { %2226 = vmatprep.mubr.bf16.mxu0 %v4632_v18  ;;  %3709 = vmatprep.mubr.bf16.mxu1 %v4119_v16 }
 0x167   : > { %v3215_v14 = vpop.f32.mrb[12].mxu0 }
 0x168   : > { %v3216_v15 = vpop.f32.mrb[13].mxu0 }
 0x169   : > { %v4747_v38 = vadd.f32 %v3216_v15, %v3215_v14  ;;  %v3218_v41 = vpop.f32.mrb[14].mxu0 }
 0x16a   : > { %v3219_v45 = vpop.f32.mrb[15].mxu0 }
 0x16b   : > { %v4750_v46 = vadd.f32 %v3219_v45, %v3218_v41  ;;  %v4131_v45 = vld [vmem:[%s4441_s20 + $0x188] ss:$12 sps:$4 sm:$0xff]  }
 0x16c   : > { %2227 = vmatmul.mubr.bf16.gmra.mrb[120].mxu0 %v4639_v19  ;;  %3710 = vmatmul.mubr.bf16.gmra.mrb[88].mxu1 %v4120_v37 }
 0x16d   : > { %2234 = vmatprep.mubr.bf16.mxu0 %v4642_v20  ;;  %3713 = vmatprep.mubr.bf16.mxu1 %v4121_v44  ;;  %v4129_v44 = vld [vmem:[%s4441_s20 + $0x19c] ss:$12 sps:$4 sm:$0xff]  }
 0x16f   : > { %v3221_v17 = vpop.f32.mrb[16].mxu0  ;;  %v3333_v18 = vpop.f32.mrb[16].mxu1 }
 0x170   : > { %v3222_v49 = vpop.f32.mrb[17].mxu0  ;;  %v3334_v50 = vpop.f32.mrb[17].mxu1 }
 0x171   : > { %v4755_v53 = vadd.f32 %v3222_v49, %v3221_v17  ;;  %v3224_v54 = vpop.f32.mrb[18].mxu0  ;;  %v4757_v56 = vadd.f32 %v3334_v50, %v3333_v18  ;;  %v3336_v57 = vpop.f32.mrb[18].mxu1 }
 0x172   : > { %v3225_v59 = vpop.f32.mrb[19].mxu0  ;;  %v3337_v62 = vpop.f32.mrb[19].mxu1 }
 0x173   : > { %v4760_v19 = vadd.f32 %v3225_v59, %v3224_v54  ;;  %v4762_v20 = vadd.f32 %v3337_v62, %v3336_v57  ;;  %v4132_v57 = vld [vmem:[%s4441_s20 + $0x198] ss:$12 sps:$4 sm:$0xff]  }
 0x174   : > { %2235 = vmatmul.mubr.bf16.gmra.mrb[124].mxu0 %v4649_v21  ;;  %3714 = vmatmul.mubr.bf16.gmra.mrb[92].mxu1 %v4122_v52 }
 0x175   : > { %2242 = vmatprep.mubr.bf16.mxu0 %v4652_v22  ;;  %3717 = vmatprep.mubr.bf16.mxu1 %v4123_v58  ;;  %v4133_v58 = vld [vmem:[%s4441_s20 + $0x1a0] ss:$12 sps:$4 sm:$0xff]  }
 0x177   : > { %v3227_v63 = vpop.f32.mrb[20].mxu0  ;;  %v3339_v2 = vpop.f32.mrb[20].mxu1 }
 0x178   : > { %v3228_v4 = vpop.f32.mrb[21].mxu0  ;;  %v3340_v5 = vpop.f32.mrb[21].mxu1 }
 0x179   : > { %v4767_v8 = vadd.f32 %v3228_v4, %v3227_v63  ;;  %v3230_v11 = vpop.f32.mrb[22].mxu0  ;;  %v4769_v35 = vadd.f32 %v3340_v5, %v3339_v2  ;;  %v3342_v31 = vpop.f32.mrb[22].mxu1 }
 0x17a   : > { %v3231_v39 = vpop.f32.mrb[23].mxu0  ;;  %v3343_v42 = vpop.f32.mrb[23].mxu1 }
 0x17b   : > { %v4772_v21 = vadd.f32 %v3231_v39, %v3230_v11  ;;  %v4774_v22 = vadd.f32 %v3343_v42, %v3342_v31 }
 0x17c   : > { %2243 = vmatmul.mubr.bf16.gmra.mrb[128].mxu0 %v4659_v23  ;;  %3718 = vmatmul.mubr.bf16.gmra.mrb[0].mxu1 %v4124_v7 }
 0x17d   : > { %2250 = vmatprep.mubr.bf16.mxu0 %v4662_v25  ;;  %3721 = vmatprep.mubr.bf16.mxu1 %v4125_v34 }
 0x17f   : > { %v3233_v24 = vpop.f32.mrb[24].mxu0  ;;  %v3345_v28 = vpop.f32.mrb[24].mxu1 }
 0x180   : > { %v3234_v32 = vpop.f32.mrb[25].mxu0  ;;  %v3346_v51 = vpop.f32.mrb[25].mxu1 }
 0x181   : > { %v4779_v40 = vadd.f32 %v3234_v32, %v3233_v24  ;;  %v3236_v43 = vpop.f32.mrb[26].mxu0  ;;  %v4781_v60 = vadd.f32 %v3346_v51, %v3345_v28  ;;  %v3348_v0 = vpop.f32.mrb[26].mxu1 }
 0x182   : > { %v3237_v3 = vpop.f32.mrb[27].mxu0  ;;  %v3349_v48 = vpop.f32.mrb[27].mxu1 }
 0x183   : > { %v4784_v23 = vadd.f32 %v3237_v3, %v3236_v43  ;;  %v4786_v25 = vadd.f32 %v3349_v48, %v3348_v0 }
 0x184   : > { %2251 = vmatmul.mubr.bf16.gmra.mrb[132].mxu0 %v4669_v26  ;;  %3722 = vmatmul.mubr.bf16.gmra.mrb[4].mxu1 %v4126_v55 }
 0x185   : > { %2258 = vmatprep.mubr.bf16.mxu0 %v4672_v27  ;;  %3725 = vmatprep.mubr.bf16.mxu1 %v4127_v1 }
 0x187   : > { %v3239_v9 = vpop.f32.mrb[28].mxu0  ;;  %v3351_v10 = vpop.f32.mrb[28].mxu1 }
 0x188   : > { %v3240_v13 = vpop.f32.mrb[29].mxu0  ;;  %v3352_v16 = vpop.f32.mrb[29].mxu1 }
 0x189   : > { %v4791_v14 = vadd.f32 %v3240_v13, %v3239_v9  ;;  %v3242_v15 = vpop.f32.mrb[30].mxu0  ;;  %v4793_v37 = vadd.f32 %v3352_v16, %v3351_v10  ;;  %v3354_v41 = vpop.f32.mrb[30].mxu1 }
 0x18a   : > { %v3243_v26 = vpop.f32.mrb[31].mxu0  ;;  %v3355_v17 = vpop.f32.mrb[31].mxu1 }
 0x18b   : > { %v4797_v18 = vadd.f32 %v3243_v26, %v3242_v15  ;;  %v4799_v27 = vadd.f32 %v3355_v17, %v3354_v41 }
 0x18c   : > { %2259 = vmatmul.mubr.bf16.gmra.mrb[136].mxu0 %v4679_v29  ;;  %3726 = vmatmul.mubr.bf16.gmra.mrb[8].mxu1 %v4128_v30 }
 0x18d   : > { %2266 = vmatprep.mubr.bf16.mxu0 %v4129_v44  ;;  %3729 = vmatprep.mubr.bf16.mxu1 %v4131_v45 }
 0x18f   : > { %v3245_v49 = vpop.f32.mrb[32].mxu0  ;;  %v3357_v50 = vpop.f32.mrb[32].mxu1 }
 0x190   : > { %v3246_v52 = vpop.f32.mrb[33].mxu0  ;;  %v3358_v54 = vpop.f32.mrb[33].mxu1 }
 0x191   : > { %v3247_v59 = vadd.f32 %v3246_v52, %v3245_v49  ;;  %v3248_v62 = vpop.f32.mrb[34].mxu0  ;;  %v4804_v63 = vadd.f32 %v3358_v54, %v3357_v50  ;;  %v3360_v2 = vpop.f32.mrb[34].mxu1 }
 0x192   : > { %v3249_v4 = vpop.f32.mrb[35].mxu0  ;;  %v3361_v5 = vpop.f32.mrb[35].mxu1 }
 0x193   : > { %v3250_v7 = vadd.f32 %v3249_v4, %v3248_v62  ;;  %v4806_v11 = vadd.f32 %v3361_v5, %v3360_v2 }
 0x194   : > { %2267 = vmatmul.mubr.bf16.gmra.mrb[140].mxu0 %v4132_v57  ;;  %3730 = vmatmul.mubr.bf16.gmra.mrb[12].mxu1 %v4133_v58 }
 0x197   : > { %v3251_v29 = vpop.f32.mrb[36].mxu0  ;;  %v3363_v31 = vpop.f32.mrb[36].mxu1 }
 0x198   : > { %v3252_v34 = vpop.f32.mrb[37].mxu0  ;;  %v3364_v39 = vpop.f32.mrb[37].mxu1 }
 0x199   : > { %v3253_v42 = vadd.f32 %v3252_v34, %v3251_v29  ;;  %v3254_v24 = vpop.f32.mrb[38].mxu0  ;;  %v4808_v28 = vadd.f32 %v3364_v39, %v3363_v31  ;;  %v3366_v32 = vpop.f32.mrb[38].mxu1 }
 0x19a   : > { %v3255_v51 = vpop.f32.mrb[39].mxu0  ;;  %v3367_v55 = vpop.f32.mrb[39].mxu1 }
 0x19b   : > { %v3256_v43 = vadd.f32 %v3255_v51, %v3254_v24  ;;  %v4810_v0 = vadd.f32 %v3367_v55, %v3366_v32 }
 0x19f   : > { %v3257_v1 = vpop.f32.mrb[40].mxu0  ;;  %v3369_v3 = vpop.f32.mrb[40].mxu1 }
 0x1a0   : > { %v3258_v48 = vpop.f32.mrb[41].mxu0  ;;  %v3370_v9 = vpop.f32.mrb[41].mxu1 }
 0x1a1   : > { %v3259_v10 = vadd.f32 %v3258_v48, %v3257_v1  ;;  %v3260_v13 = vpop.f32.mrb[42].mxu0  ;;  %v4812_v16 = vadd.f32 %v3370_v9, %v3369_v3  ;;  %v3372_v30 = vpop.f32.mrb[42].mxu1 }
 0x1a2   : > { %v3261_v15 = vpop.f32.mrb[43].mxu0  ;;  %v3373_v41 = vpop.f32.mrb[43].mxu1 }
 0x1a3   : > { %v3262_v44 = vadd.f32 %v3261_v15, %v3260_v13  ;;  %v4814_v45 = vadd.f32 %v3373_v41, %v3372_v30 }
 0x1a7   : > { %v3263_v26 = vpop.f32.mrb[44].mxu0  ;;  %v3375_v17 = vpop.f32.mrb[44].mxu1 }
 0x1a8   : > { %v3264_v49 = vpop.f32.mrb[45].mxu0  ;;  %v3376_v50 = vpop.f32.mrb[45].mxu1 }
 0x1a9   : > { %v3265_v52 = vadd.f32 %v3264_v49, %v3263_v26  ;;  %v3266_v54 = vpop.f32.mrb[46].mxu0  ;;  %v4816_v57 = vadd.f32 %v3376_v50, %v3375_v17  ;;  %v3378_v58 = vpop.f32.mrb[46].mxu1 }
 0x1aa   : > { %v3267_v62 = vpop.f32.mrb[47].mxu0  ;;  %v3379_v2 = vpop.f32.mrb[47].mxu1 }
 0x1ab   : > { %v3268_v4 = vadd.f32 %v3267_v62, %v3266_v54  ;;  %v4818_v5 = vadd.f32 %v3379_v2, %v3378_v58 }
 0x1af   : > { %v3269_v29 = vpop.f32.mrb[48].mxu0  ;;  %v3381_v31 = vpop.f32.mrb[48].mxu1 }
 0x1b0   : > { %v3270_v34 = vpop.f32.mrb[49].mxu0  ;;  %v3382_v39 = vpop.f32.mrb[49].mxu1 }
 0x1b1   : > { %v4820_v24 = vadd.f32 %v3270_v34, %v3269_v29  ;;  %v3383_v32 = vadd.f32 %v3382_v39, %v3381_v31  ;;  %v3272_v51 = vpop.f32.mrb[50].mxu0  ;;  %v3384_v55 = vpop.f32.mrb[50].mxu1 }
 0x1b2   : > { %v3273_v1 = vpop.f32.mrb[51].mxu0  ;;  %v3385_v3 = vpop.f32.mrb[51].mxu1 }
 0x1b3   : > { %v4822_v48 = vadd.f32 %v3383_v32, %v3247_v59  ;;  %v4824_v9 = vadd.f32 %v3273_v1, %v3272_v51  ;;  %v3386_v13 = vadd.f32 %v3385_v3, %v3384_v55 }
 0x1b5   : > { %v4826_v30 = vadd.f32 %v3386_v13, %v3250_v7 }
 0x1b7   : > { %v3275_v15 = vpop.f32.mrb[52].mxu0  ;;  %v3387_v41 = vpop.f32.mrb[52].mxu1 }
 0x1b8   : > { %v3276_v26 = vpop.f32.mrb[53].mxu0  ;;  %v3388_v17 = vpop.f32.mrb[53].mxu1 }
 0x1b9   : > { %v4828_v49 = vadd.f32 %v3276_v26, %v3275_v15  ;;  %v3389_v50 = vadd.f32 %v3388_v17, %v3387_v41  ;;  %v3278_v54 = vpop.f32.mrb[54].mxu0  ;;  %v3390_v58 = vpop.f32.mrb[54].mxu1 }
 0x1ba   : > { %v3279_v62 = vpop.f32.mrb[55].mxu0  ;;  %v3391_v2 = vpop.f32.mrb[55].mxu1 }
 0x1bb   : > { %v4830_v29 = vadd.f32 %v3389_v50, %v3253_v42  ;;  %v4832_v59 = vadd.f32 %v3279_v62, %v3278_v54  ;;  %v3392_v31 = vadd.f32 %v3391_v2, %v3390_v58 }
 0x1bd   : > { %v4834_v34 = vadd.f32 %v3392_v31, %v3256_v43 }
 0x1bf   : > { %5186 = vst [vmem:[#allocation11_spill] sm:$0xff] %v4834_v34  ;;  %v3281_v7 = vpop.f32.mrb[56].mxu0  ;;  %v3393_v39 = vpop.f32.mrb[56].mxu1 }
 0x1c0   : > { %v3282_v32 = vpop.f32.mrb[57].mxu0  ;;  %v3394_v51 = vpop.f32.mrb[57].mxu1 }
 0x1c1   : > { %v4836_v55 = vadd.f32 %v3282_v32, %v3281_v7  ;;  %v3395_v1 = vadd.f32 %v3394_v51, %v3393_v39  ;;  %v3284_v3 = vpop.f32.mrb[58].mxu0  ;;  %v3396_v13 = vpop.f32.mrb[58].mxu1 }
 0x1c2   : > { %v3285_v15 = vpop.f32.mrb[59].mxu0  ;;  %v3397_v41 = vpop.f32.mrb[59].mxu1 }
 0x1c3   : > { %v4838_v26 = vadd.f32 %v3395_v1, %v3259_v10  ;;  %v4840_v42 = vadd.f32 %v3285_v15, %v3284_v3  ;;  %v3398_v17 = vadd.f32 %v3397_v41, %v3396_v13 }
 0x1c5   : > { %v4842_v50 = vadd.f32 %v3398_v17, %v3262_v44 }
 0x1c7   : > { %5187 = vst [vmem:[#allocation12_spill] sm:$0xff] %v4842_v50  ;;  %v3287_v43 = vpop.f32.mrb[60].mxu0  ;;  %v3399_v54 = vpop.f32.mrb[60].mxu1 }
 0x1c8   : > { %v3288_v58 = vpop.f32.mrb[61].mxu0  ;;  %v3400_v62 = vpop.f32.mrb[61].mxu1 }
 0x1c9   : > { %v4844_v2 = vadd.f32 %v3288_v58, %v3287_v43  ;;  %v3401_v31 = vadd.f32 %v3400_v62, %v3399_v54  ;;  %v3290_v7 = vpop.f32.mrb[62].mxu0  ;;  %v3402_v39 = vpop.f32.mrb[62].mxu1 }
 0x1ca   : > { %v3291_v32 = vpop.f32.mrb[63].mxu0  ;;  %v3403_v51 = vpop.f32.mrb[63].mxu1 }
 0x1cb   : > { %v4846_v34 = vadd.f32 %v3401_v31, %v3265_v52  ;;  %v4848_v10 = vadd.f32 %v3291_v32, %v3290_v7  ;;  %v3404_v1 = vadd.f32 %v3403_v51, %v3402_v39 }
 0x1cd   : > { %v4850_v3 = vadd.f32 %v3404_v1, %v3268_v4 }
 0x1cf   : > { %v3607_v44 = vpop.f32.mrb[64].mxu0  ;;  %v3405_v13 = vpop.f32.mrb[64].mxu1 }
 0x1d0   : > { %v1001_v15 = vadd.f32 %v3607_v44, %v4731_v61  ;;  %v992_v41 = vpop.f32.mrb[65].mxu0  ;;  %v3406_v17 = vpop.f32.mrb[65].mxu1 }
 0x1d1   : > { %v993_v43 = vadd.f32 %v4722_v47, %v992_v41  ;;  %v3407_v54 = vadd.f32 %v3406_v17, %v3405_v13  ;;  %v3608_v58 = vpop.f32.mrb[66].mxu0  ;;  %v3408_v62 = vpop.f32.mrb[66].mxu1 }
 0x1d2   : > { %v4855_v50 = vadd.f32 %v4769_v35, %v1001_v15  ;;  %v1004_v52 = vadd.f32 %v3608_v58, %v4734_v6  ;;  %v995_v31 = vpop.f32.mrb[67].mxu0  ;;  %v3409_v7 = vpop.f32.mrb[67].mxu1 }
 0x1d3   : > { %v4859_v4 = vadd.f32 %v4757_v56, %v993_v43  ;;  %v4862_v39 = vadd.f32 %v3407_v54, %v4820_v24  ;;  %v996_v61 = vadd.f32 %v4725_v36, %v995_v31  ;;  %v3410_v32 = vadd.f32 %v3409_v7, %v3408_v62 }
 0x1d4   : > { %v4866_v47 = vadd.f32 %v4774_v22, %v1004_v52 }
 0x1d5   : > { %v4869_v51 = vadd.f32 %v4762_v20, %v996_v61  ;;  %v4872_v35 = vadd.f32 %v3410_v32, %v4824_v9 }
 0x1d7   : > { %v3611_v6 = vpop.f32.mrb[68].mxu0  ;;  %v3411_v1 = vpop.f32.mrb[68].mxu1 }
 0x1d8   : > { %v1017_v56 = vadd.f32 %v3611_v6, %v4747_v38  ;;  %v1008_v44 = vpop.f32.mrb[69].mxu0  ;;  %v3412_v13 = vpop.f32.mrb[69].mxu1 }
 0x1d9   : > { %v1009_v24 = vadd.f32 %v4739_v12, %v1008_v44  ;;  %v3413_v15 = vadd.f32 %v3412_v13, %v3411_v1  ;;  %v3612_v36 = vpop.f32.mrb[70].mxu0  ;;  %v3414_v41 = vpop.f32.mrb[70].mxu1 }
 0x1da   : > { %v4877_v22 = vadd.f32 %v4793_v37, %v1017_v56  ;;  %v1020_v20 = vadd.f32 %v3612_v36, %v4750_v46  ;;  %v1011_v17 = vpop.f32.mrb[71].mxu0  ;;  %v3415_v43 = vpop.f32.mrb[71].mxu1 }
 0x1db   : > { %v4881_v9 = vadd.f32 %v4781_v60, %v1009_v24  ;;  %v4884_v54 = vadd.f32 %v3413_v15, %v4828_v49  ;;  %v1012_v38 = vadd.f32 %v4742_v33, %v1011_v17  ;;  %v3416_v58 = vadd.f32 %v3415_v43, %v3414_v41 }
 0x1dc   : > { %v4888_v12 = vadd.f32 %v4799_v27, %v1020_v20 }
 0x1dd   : > { %v4891_v62 = vadd.f32 %v4786_v25, %v1012_v38  ;;  %v4894_v37 = vadd.f32 %v3416_v58, %v4832_v59 }
 0x1df   : > { %v3615_v46 = vpop.f32.mrb[72].mxu0  ;;  %v3417_v52 = vpop.f32.mrb[72].mxu1 }
 0x1e0   : > { %v1033_v60 = vadd.f32 %v3615_v46, %v4767_v8  ;;  %v1024_v31 = vpop.f32.mrb[73].mxu0  ;;  %v3418_v7 = vpop.f32.mrb[73].mxu1 }
 0x1e1   : > { %v1025_v49 = vadd.f32 %v4755_v53, %v1024_v31  ;;  %v3419_v61 = vadd.f32 %v3418_v7, %v3417_v52  ;;  %v3616_v33 = vpop.f32.mrb[74].mxu0  ;;  %v3420_v32 = vpop.f32.mrb[74].mxu1 }
 0x1e2   : > { %v4899_v27 = vadd.f32 %v4808_v28, %v1033_v60  ;;  %v1036_v25 = vadd.f32 %v3616_v33, %v4772_v21  ;;  %v1027_v6 = vpop.f32.mrb[75].mxu0  ;;  %v3421_v1 = vpop.f32.mrb[75].mxu1 }
 0x1e3   : > { %v4903_v59 = vadd.f32 %v4804_v63, %v1025_v49  ;;  %v4906_v56 = vadd.f32 %v3419_v61, %v4836_v55  ;;  %v1028_v8 = vadd.f32 %v4760_v19, %v1027_v6  ;;  %v3422_v44 = vadd.f32 %v3421_v1, %v3420_v32 }
 0x1e4   : > { %v4910_v53 = vadd.f32 %v4810_v0, %v1036_v25 }
 0x1e5   : > { %v1349_v13 = vadd.f32 %v4806_v11, %v1028_v8  ;;  %v4914_v28 = vadd.f32 %v3422_v44, %v4840_v42 }
 0x1e7   : > { %v3619_v21 = vpop.f32.mrb[76].mxu0  ;;  %v3423_v24 = vpop.f32.mrb[76].mxu1 }
 0x1e8   : > { %v1049_v15 = vadd.f32 %v3619_v21, %v4791_v14  ;;  %v1040_v63 = vpop.f32.mrb[77].mxu0  ;;  %v3424_v36 = vpop.f32.mrb[77].mxu1 }
 0x1e9   : > { %v1041_v55 = vadd.f32 %v4779_v40, %v1040_v63  ;;  %v3425_v41 = vadd.f32 %v3424_v36, %v3423_v24  ;;  %v3620_v20 = vpop.f32.mrb[78].mxu0  ;;  %v3426_v19 = vpop.f32.mrb[78].mxu1 }
 0x1ea   : > { %v4919_v17 = vadd.f32 %v4816_v57, %v1049_v15  ;;  %v1052_v0 = vadd.f32 %v3620_v20, %v4797_v18  ;;  %v1043_v11 = vpop.f32.mrb[79].mxu0  ;;  %v3427_v43 = vpop.f32.mrb[79].mxu1 }
 0x1eb   : > { %v1362_v42 = vadd.f32 %v4812_v16, %v1041_v55  ;;  %v4924_v38 = vadd.f32 %v3425_v41, %v4844_v2  ;;  %v1044_v14 = vadd.f32 %v4784_v23, %v1043_v11  ;;  %v3428_v58 = vadd.f32 %v3427_v43, %v3426_v19 }
 0x1ec   : > { %v4928_v40 = vadd.f32 %v4818_v5, %v1052_v0 }
 0x1ed   : > { %v1365_v46 = vadd.f32 %v4814_v45, %v1044_v14  ;;  %v4932_v57 = vadd.f32 %v3428_v58, %v4848_v10 }
 0x1ef   : > { %v3469_v52 = vpop.f32.mrb[80].mxu0 }
 0x1f0   : > { %v3470_v18 = vpop.f32.mrb[81].mxu0 }
 0x1f1   : > { %v3471_v60 = vadd.f32 %v3470_v18, %v3469_v52  ;;  %v3472_v31 = vpop.f32.mrb[82].mxu0 }
 0x1f2   : > { %v3473_v7 = vpop.f32.mrb[83].mxu0 }
 0x1f3   : > { %v3474_v16 = vadd.f32 %v3473_v7, %v3472_v31  ;;  %v4935_v2 = vadd.f32 %v3471_v60, %v4859_v4 }
 0x1f5   : > { %v4938_v23 = vadd.f32 %v3474_v16, %v4869_v51 }
 0x1f7   : > { %v3475_v49 = vpop.f32.mrb[84].mxu0 }
 0x1f8   : > { %v3476_v5 = vpop.f32.mrb[85].mxu0 }
 0x1f9   : > { %v3477_v61 = vadd.f32 %v3476_v5, %v3475_v49  ;;  %v3478_v33 = vpop.f32.mrb[86].mxu0 }
 0x1fa   : > { %v3479_v45 = vpop.f32.mrb[87].mxu0 }
 0x1fb   : > { %v3480_v32 = vadd.f32 %v3479_v45, %v3478_v33  ;;  %v3751_v10 = vadd.f32 %v3477_v61, %v4855_v50 }
 0x1fd   : > { %v3759_v25 = vadd.f32 %v3480_v32, %v4866_v47 }
 0x1ff   : > { %v3481_v6 = vpop.f32.mrb[88].mxu0 }
 0x200   : > { %v3482_v1 = vpop.f32.mrb[89].mxu0 }
 0x201   : > { %v3483_v8 = vadd.f32 %v3482_v1, %v3481_v6  ;;  %v3484_v44 = vpop.f32.mrb[90].mxu0 }
 0x202   : > { %v3485_v21 = vpop.f32.mrb[91].mxu0 }
 0x203   : > { %v3486_v4 = vadd.f32 %v3485_v21, %v3484_v44  ;;  %v4943_v24 = vadd.f32 %v3483_v8, %v4881_v9 }
 0x205   : > { %v4946_v51 = vadd.f32 %v3486_v4, %v4891_v62 }
 0x207   : > { %v3487_v15 = vpop.f32.mrb[92].mxu0 }
 0x208   : > { %v3488_v63 = vpop.f32.mrb[93].mxu0 }
 0x209   : > { %v3489_v36 = vadd.f32 %v3488_v63, %v3487_v15  ;;  %v3490_v55 = vpop.f32.mrb[94].mxu0 }
 0x20a   : > { %v3491_v41 = vpop.f32.mrb[95].mxu0 }
 0x20b   : > { %v3492_v50 = vadd.f32 %v3491_v41, %v3490_v55  ;;  %v4949_v47 = vadd.f32 %v3489_v36, %v4877_v22  ;;  %v4983_v41 = vld [vmem:[%s5170_s3] ss:$0 sm:$0xff] }
 0x20d   : > { %v4952_v20 = vadd.f32 %v3492_v50, %v4888_v12 }
 0x20f   : > { %v3493_v19 = vpop.f32.mrb[96].mxu0 }
 0x210   : > { %v3494_v0 = vpop.f32.mrb[97].mxu0 }
 0x211   : > { %v3495_v11 = vadd.f32 %v3494_v0, %v3493_v19  ;;  %v3496_v9 = vpop.f32.mrb[98].mxu0 }
 0x212   : > { %v3497_v43 = vpop.f32.mrb[99].mxu0 }
 0x213   : > { %v3498_v14 = vadd.f32 %v3497_v43, %v3496_v9  ;;  %v4955_v62 = vadd.f32 %v3495_v11, %v4903_v59 }
 0x215   : > { %v4957_v58 = vadd.f32 %v3498_v14, %v1349_v13 }
 0x217   : > { %v3499_v52 = vpop.f32.mrb[100].mxu0 }
 0x218   : > { %v3500_v18 = vpop.f32.mrb[101].mxu0 }
 0x219   : > { %v3501_v60 = vadd.f32 %v3500_v18, %v3499_v52  ;;  %v3502_v31 = vpop.f32.mrb[102].mxu0 }
 0x21a   : > { %v3503_v22 = vpop.f32.mrb[103].mxu0 }
 0x21b   : > { %v3504_v7 = vadd.f32 %v3503_v22, %v3502_v31  ;;  %v4960_v12 = vadd.f32 %v3501_v60, %v4899_v27 }
 0x21d   : > { %v4963_v16 = vadd.f32 %v3504_v7, %v4910_v53 }
 0x21f   : > { %v3505_v49 = vpop.f32.mrb[104].mxu0 }
 0x220   : > { %v3506_v5 = vpop.f32.mrb[105].mxu0 }
 0x221   : > { %v3507_v61 = vadd.f32 %v3506_v5, %v3505_v49  ;;  %v3508_v33 = vpop.f32.mrb[106].mxu0 }
 0x222   : > { %v3509_v59 = vpop.f32.mrb[107].mxu0 }
 0x223   : > { %v3510_v45 = vadd.f32 %v3509_v59, %v3508_v33  ;;  %v4965_v13 = vadd.f32 %v3507_v61, %v1362_v42  ;;  %v4978_v42 = vld [vmem:[%s5169_s2] ss:$0 sm:$0xff] }
 0x225   : > { %v4967_v32 = vadd.f32 %v3510_v45, %v1365_v46 }
 0x227   : > { %v3511_v6 = vpop.f32.mrb[108].mxu0 }
 0x228   : > { %v3512_v1 = vpop.f32.mrb[109].mxu0 }
 0x229   : > { %v3513_v8 = vadd.f32 %v3512_v1, %v3511_v6  ;;  %v3514_v44 = vpop.f32.mrb[110].mxu0 }
 0x22a   : > { %v3515_v21 = vpop.f32.mrb[111].mxu0 }
 0x22b   : > { %v3516_v27 = vadd.f32 %v3515_v21, %v3514_v44  ;;  %v4970_v4 = vadd.f32 %v3513_v8, %v4919_v17 }
 0x22d   : > { %v4973_v53 = vadd.f32 %v3516_v27, %v4928_v40 }
 0x22f   : > { %v3517_v15 = vpop.f32.mrb[112].mxu0  ;;  %v3703_v63 = vpop.f32.mrb[80].mxu1 }
 0x230   : > { %v3752_v46 = vadd.f32 %v3751_v10, %v3703_v63  ;;  %v3518_v36 = vpop.f32.mrb[113].mxu0  ;;  %v2309_v55 = vpop.f32.mrb[81].mxu1 }
 0x231   : > { %v3519_v17 = vadd.f32 %v3518_v36, %v3517_v15  ;;  %v3756_v50 = vadd.f32 %v4935_v2, %v2309_v55  ;;  %v3520_v40 = vpop.f32.mrb[114].mxu0  ;;  %v3704_v19 = vpop.f32.mrb[82].mxu1 }
 0x232   : > { %v2477_v0 = vmul.f32 %v3752_v46, %v4978_v42  ;;  %v3760_v11 = vadd.f32 %v3759_v25, %v3704_v19  ;;  %v3521_v9 = vpop.f32.mrb[115].mxu0  ;;  %v2312_v43 = vpop.f32.mrb[83].mxu1 }
 0x233   : > { %v2475_v10 = vmul.f32 %v3756_v50, %v4978_v42  ;;  %v3522_v14 = vadd.f32 %v3521_v9, %v3520_v40  ;;  %v3764_v52 = vadd.f32 %v4938_v23, %v2312_v43  ;;  %v4990_v18 = vadd.f32 %v4822_v48, %v3519_v17 }
 0x234   : > { %v2516_v60 = vadd.f32 %v4983_v41, %v2477_v0  ;;  %v2478_v2 = vmul.f32 %v3760_v11, %v4978_v42  ;;  %v5188_v11 = vld [vmem:[#allocation11_spill] sm:$0xff] }
 0x235   : > { %v2514_v31 = vadd.f32 %v4983_v41, %v2475_v10  ;;  %v2476_v22 = vmul.f32 %v3764_v52, %v4978_v42  ;;  %v4997_v25 = vadd.f32 %v4826_v30, %v3522_v14 }
 0x236   : > { %v2517_v7 = vadd.f32 %v4983_v41, %v2478_v2  ;;  %v2548_v48 = vmax.f32 %v2516_v60, 0.0 }
 0x237   : > { %v2515_v49 = vadd.f32 %v4983_v41, %v2476_v22  ;;  %v3523_v23 = vpop.f32.mrb[116].mxu0  ;;  %v3707_v5 = vpop.f32.mrb[84].mxu1  ;;  %v2546_v6 = vmax.f32 %v2514_v31, 0.0 }
 0x238   : > { %v2549_v61 = vmax.f32 %v2517_v7, 0.0  ;;  %v3768_v33 = vadd.f32 %v4949_v47, %v3707_v5  ;;  %v3524_v59 = vpop.f32.mrb[117].mxu0  ;;  %v2325_v45 = vpop.f32.mrb[85].mxu1 }
 0x239   : > { %v2547_v1 = vmax.f32 %v2515_v49, 0.0  ;;  %v3525_v8 = vadd.f32 %v3524_v59, %v3523_v23  ;;  %v3772_v44 = vadd.f32 %v4943_v24, %v2325_v45  ;;  %v3526_v30 = vpop.f32.mrb[118].mxu0  ;;  %v3708_v21 = vpop.f32.mrb[86].mxu1 }
 0x23a   : > { %v3094_v27 = vpack.c.bf16 %v2549_v61, %v2548_v48  ;;  %v2481_v15 = vmul.f32 %v3768_v33, %v4978_v42  ;;  %v3776_v63 = vadd.f32 %v4952_v20, %v3708_v21  ;;  %v3527_v46 = vpop.f32.mrb[119].mxu0  ;;  %v2328_v36 = vpop.f32.mrb[87].mxu1 }
 0x23b   : > { %v3089_v55 = vpack.c.bf16 %v2547_v1, %v2546_v6  ;;  %v2479_v17 = vmul.f32 %v3772_v44, %v4978_v42  ;;  %v3528_v47 = vadd.f32 %v3527_v46, %v3526_v30  ;;  %v3780_v50 = vadd.f32 %v4946_v51, %v2328_v36 }
 0x23c   : > { %3166 = vst [vmem:[%s5008_s10 + $0x8] sm:$0xff] %v3094_v27   ;;  %v2520_v24 = vadd.f32 %v4983_v41, %v2481_v15  ;;  %v2482_v40 = vmul.f32 %v3776_v63, %v4978_v42  ;;  %v5014_v19 = vadd.f32 %v4830_v29, %v3525_v8  ;;  %v5189_v15 = vld [vmem:[#allocation12_spill] sm:$0xff] }
 0x23d   : > { %3090 = vst [vmem:[%s5008_s10] sm:$0xff] %v3089_v55   ;;  %v2518_v20 = vadd.f32 %v4983_v41, %v2479_v17  ;;  %v2480_v0 = vmul.f32 %v3780_v50, %v4978_v42  ;;  %v5020_v9 = vadd.f32 %v5188_v11, %v3528_v47 }
 0x23e   : > { %v2521_v51 = vadd.f32 %v4983_v41, %v2482_v40  ;;  %v2552_v52 = vmax.f32 %v2520_v24, 0.0 }
 0x23f   : > { %v2519_v43 = vadd.f32 %v4983_v41, %v2480_v0  ;;  %v3529_v10 = vpop.f32.mrb[120].mxu0  ;;  %v3711_v14 = vpop.f32.mrb[88].mxu1  ;;  %v2550_v22 = vmax.f32 %v2518_v20, 0.0 }
 0x240   : > { %v2553_v60 = vmax.f32 %v2521_v51, 0.0  ;;  %v3784_v2 = vadd.f32 %v4960_v12, %v3711_v14  ;;  %v3530_v29 = vpop.f32.mrb[121].mxu0  ;;  %v2341_v31 = vpop.f32.mrb[89].mxu1 }
 0x241   : > { %v2551_v7 = vmax.f32 %v2519_v43, 0.0  ;;  %v3531_v49 = vadd.f32 %v3530_v29, %v3529_v10  ;;  %v3788_v23 = vadd.f32 %v4955_v62, %v2341_v31  ;;  %v3532_v5 = vpop.f32.mrb[122].mxu0  ;;  %v3712_v48 = vpop.f32.mrb[90].mxu1 }
 0x242   : > { %v3104_v61 = vpack.c.bf16 %v2553_v60, %v2552_v52  ;;  %v2485_v33 = vmul.f32 %v3784_v2, %v4978_v42  ;;  %v3792_v59 = vadd.f32 %v4963_v16, %v3712_v48  ;;  %v3533_v45 = vpop.f32.mrb[123].mxu0  ;;  %v2344_v6 = vpop.f32.mrb[91].mxu1 }
 0x243   : > { %v3099_v1 = vpack.c.bf16 %v2551_v7, %v2550_v22  ;;  %v2483_v12 = vmul.f32 %v3788_v23, %v4978_v42  ;;  %v3534_v8 = vadd.f32 %v3533_v45, %v3532_v5  ;;  %v3796_v44 = vadd.f32 %v4957_v58, %v2344_v6 }
 0x244   : > { %3168 = vst [vmem:[%s5008_s10 + $0x18] sm:$0xff] %v3104_v61   ;;  %v2524_v30 = vadd.f32 %v4983_v41, %v2485_v33  ;;  %v2486_v62 = vmul.f32 %v3792_v59, %v4978_v42  ;;  %v5034_v21 = vadd.f32 %v4838_v26, %v3531_v49 }
 0x245   : > { %3167 = vst [vmem:[%s5008_s10 + $0x10] sm:$0xff] %v3099_v1   ;;  %v2522_v27 = vadd.f32 %v4983_v41, %v2483_v12  ;;  %v2484_v16 = vmul.f32 %v3796_v44, %v4978_v42  ;;  %v5040_v63 = vadd.f32 %v5189_v15, %v3534_v8 }
 0x246   : > { %v2525_v46 = vadd.f32 %v4983_v41, %v2486_v62  ;;  %v2556_v17 = vmax.f32 %v2524_v30, 0.0 }
 0x247   : > { %v2523_v58 = vadd.f32 %v4983_v41, %v2484_v16  ;;  %v3535_v36 = vpop.f32.mrb[124].mxu0  ;;  %v3715_v55 = vpop.f32.mrb[92].mxu1  ;;  %v2554_v40 = vmax.f32 %v2522_v27, 0.0 }
 0x248   : > { %v2557_v47 = vmax.f32 %v2525_v46, 0.0  ;;  %v3800_v50 = vadd.f32 %v4970_v4, %v3715_v55  ;;  %v3536_v26 = vpop.f32.mrb[125].mxu0  ;;  %v2357_v24 = vpop.f32.mrb[93].mxu1 }
 0x249   : > { %v2555_v20 = vmax.f32 %v2523_v58, 0.0  ;;  %v3537_v0 = vadd.f32 %v3536_v26, %v3535_v36  ;;  %v3804_v11 = vadd.f32 %v4965_v13, %v2357_v24  ;;  %v3538_v51 = vpop.f32.mrb[126].mxu0  ;;  %v3716_v43 = vpop.f32.mrb[94].mxu1 }
 0x24a   : > { %v3114_v10 = vpack.c.bf16 %v2557_v47, %v2556_v17  ;;  %v2489_v14 = vmul.f32 %v3800_v50, %v4978_v42  ;;  %v3808_v52 = vadd.f32 %v4973_v53, %v3716_v43  ;;  %v3539_v60 = vpop.f32.mrb[127].mxu0  ;;  %v2360_v2 = vpop.f32.mrb[95].mxu1 }
 0x24b   : > { %v3109_v29 = vpack.c.bf16 %v2555_v20, %v2554_v40  ;;  %v2487_v4 = vmul.f32 %v3804_v11, %v4978_v42  ;;  %v3540_v31 = vadd.f32 %v3539_v60, %v3538_v51  ;;  %v3812_v22 = vadd.f32 %v4967_v32, %v2360_v2 }
 0x24c   : > { %3170 = vst [vmem:[%s5008_s10 + $0x28] sm:$0xff] %v3114_v10   ;;  %v2528_v7 = vadd.f32 %v4983_v41, %v2489_v14  ;;  %v2490_v13 = vmul.f32 %v3808_v52, %v4978_v42  ;;  %v3826_v49 = vadd.f32 %v4846_v34, %v3537_v0 }
 0x24d   : > { %3169 = vst [vmem:[%s5008_s10 + $0x20] sm:$0xff] %v3109_v29   ;;  %v2526_v23 = vadd.f32 %v4983_v41, %v2487_v4  ;;  %v2488_v53 = vmul.f32 %v3812_v22, %v4978_v42  ;;  %v3832_v5 = vadd.f32 %v4850_v3, %v3540_v31 }
 0x24e   : > { %v2529_v48 = vadd.f32 %v4983_v41, %v2490_v13  ;;  %v2560_v59 = vmax.f32 %v2528_v7, 0.0 }
 0x24f   : > { %v2527_v61 = vadd.f32 %v4983_v41, %v2488_v53  ;;  %v3541_v33 = vpop.f32.mrb[128].mxu0  ;;  %v3719_v32 = vpop.f32.mrb[0].mxu1  ;;  %v2558_v34 = vmax.f32 %v2526_v23, 0.0 }
 0x250   : > { %v2561_v45 = vmax.f32 %v2529_v48, 0.0  ;;  %v3815_v6 = vadd.f32 %v5014_v19, %v3719_v32  ;;  %v3542_v1 = vpop.f32.mrb[129].mxu0  ;;  %v2373_v12 = vpop.f32.mrb[1].mxu1 }
 0x251   : > { %v2559_v8 = vmax.f32 %v2527_v61, 0.0  ;;  %v3543_v44 = vadd.f32 %v3542_v1, %v3541_v33  ;;  %v3818_v30 = vadd.f32 %v4990_v18, %v2373_v12  ;;  %v3544_v3 = vpop.f32.mrb[130].mxu0  ;;  %v3720_v62 = vpop.f32.mrb[2].mxu1 }
 0x252   : > { %v3124_v27 = vpack.c.bf16 %v2561_v45, %v2560_v59  ;;  %v2493_v16 = vmul.f32 %v3815_v6, %v4978_v42  ;;  %v3821_v15 = vadd.f32 %v5020_v9, %v3720_v62  ;;  %v3545_v46 = vpop.f32.mrb[131].mxu0  ;;  %v2376_v58 = vpop.f32.mrb[3].mxu1 }
 0x253   : > { %v3119_v36 = vpack.c.bf16 %v2559_v8, %v2558_v34  ;;  %v2491_v19 = vmul.f32 %v3818_v30, %v4978_v42  ;;  %v3546_v55 = vadd.f32 %v3545_v46, %v3544_v3  ;;  %v3824_v17 = vadd.f32 %v4997_v25, %v2376_v58 }
 0x254   : > { %3172 = vst [vmem:[%s5008_s10 + $0x38] sm:$0xff] %v3124_v27   ;;  %v2532_v47 = vadd.f32 %v4983_v41, %v2493_v16  ;;  %v2494_v18 = vmul.f32 %v3821_v15, %v4978_v42  ;;  %v3841_v50 = vadd.f32 %v4862_v39, %v3543_v44 }
 0x255   : > { %3171 = vst [vmem:[%s5008_s10 + $0x30] sm:$0xff] %v3119_v36   ;;  %v2530_v26 = vadd.f32 %v4983_v41, %v2491_v19  ;;  %v2492_v9 = vmul.f32 %v3824_v17, %v4978_v42  ;;  %v3847_v24 = vadd.f32 %v4872_v35, %v3546_v55 }
 0x256   : > { %v2533_v40 = vadd.f32 %v4983_v41, %v2494_v18  ;;  %v2564_v11 = vmax.f32 %v2532_v47, 0.0 }
 0x257   : > { %v2531_v20 = vadd.f32 %v4983_v41, %v2492_v9  ;;  %v3547_v0 = vpop.f32.mrb[132].mxu0  ;;  %v3723_v25 = vpop.f32.mrb[4].mxu1  ;;  %v2562_v39 = vmax.f32 %v2530_v26, 0.0 }
 0x258   : > { %v2565_v51 = vmax.f32 %v2533_v40, 0.0  ;;  %v3827_v43 = vadd.f32 %v3826_v49, %v3723_v25  ;;  %v3548_v10 = vpop.f32.mrb[133].mxu0  ;;  %v2389_v14 = vpop.f32.mrb[5].mxu1 }
 0x259   : > { %v2563_v52 = vmax.f32 %v2531_v20, 0.0  ;;  %v3549_v60 = vadd.f32 %v3548_v10, %v3547_v0  ;;  %v3830_v2 = vadd.f32 %v5034_v21, %v2389_v14  ;;  %v3550_v29 = vpop.f32.mrb[134].mxu0  ;;  %v3724_v35 = vpop.f32.mrb[6].mxu1 }
 0x25a   : > { %v3134_v4 = vpack.c.bf16 %v2565_v51, %v2564_v11  ;;  %v2497_v31 = vmul.f32 %v3827_v43, %v4978_v42  ;;  %v3833_v22 = vadd.f32 %v3832_v5, %v3724_v35  ;;  %v3551_v7 = vpop.f32.mrb[135].mxu0  ;;  %v2392_v13 = vpop.f32.mrb[7].mxu1 }
 0x25b   : > { %v3129_v23 = vpack.c.bf16 %v2563_v52, %v2562_v39  ;;  %v2495_v49 = vmul.f32 %v3830_v2, %v4978_v42  ;;  %v3552_v53 = vadd.f32 %v3551_v7, %v3550_v29  ;;  %v3836_v48 = vadd.f32 %v5040_v63, %v2392_v13 }
 0x25c   : > { %3174 = vst [vmem:[%s5008_s10 + $0x48] sm:$0xff] %v3134_v4   ;;  %v2536_v61 = vadd.f32 %v4983_v41, %v2497_v31  ;;  %v2498_v21 = vmul.f32 %v3833_v22, %v4978_v42  ;;  %v3838_v33 = vadd.f32 %v4884_v54, %v3549_v60 }
 0x25d   : > { %3173 = vst [vmem:[%s5008_s10 + $0x40] sm:$0xff] %v3129_v23   ;;  %v2534_v32 = vadd.f32 %v4983_v41, %v2495_v49  ;;  %v2496_v5 = vmul.f32 %v3836_v48, %v4978_v42  ;;  %v3844_v59 = vadd.f32 %v4894_v37, %v3552_v53 }
 0x25e   : > { %v2537_v45 = vadd.f32 %v4983_v41, %v2498_v21  ;;  %v2568_v12 = vmax.f32 %v2536_v61, 0.0 }
 0x25f   : > { %v2535_v6 = vadd.f32 %v4983_v41, %v2496_v5  ;;  %v3553_v1 = vpop.f32.mrb[136].mxu0  ;;  %v3727_v63 = vpop.f32.mrb[8].mxu1  ;;  %v2566_v54 = vmax.f32 %v2534_v32, 0.0 }
 0x260   : > { %v2569_v34 = vmax.f32 %v2537_v45, 0.0  ;;  %v3839_v8 = vadd.f32 %v3838_v33, %v3727_v63  ;;  %v3554_v44 = vpop.f32.mrb[137].mxu0  ;;  %v2405_v30 = vpop.f32.mrb[9].mxu1 }
 0x261   : > { %v2567_v3 = vmax.f32 %v2535_v6, 0.0  ;;  %v3555_v62 = vadd.f32 %v3554_v44, %v3553_v1  ;;  %v3842_v27 = vadd.f32 %v3841_v50, %v2405_v30  ;;  %v3556_v16 = vpop.f32.mrb[138].mxu0  ;;  %v3728_v15 = vpop.f32.mrb[10].mxu1 }
 0x262   : > { %v3144_v37 = vpack.c.bf16 %v2569_v34, %v2568_v12  ;;  %v2501_v46 = vmul.f32 %v3839_v8, %v4978_v42  ;;  %v3845_v58 = vadd.f32 %v3844_v59, %v3728_v15  ;;  %v3557_v36 = vpop.f32.mrb[139].mxu0  ;;  %v2408_v19 = vpop.f32.mrb[11].mxu1 }
 0x263   : > { %v3139_v55 = vpack.c.bf16 %v2567_v3, %v2566_v54  ;;  %v2499_v17 = vmul.f32 %v3842_v27, %v4978_v42  ;;  %v3558_v47 = vadd.f32 %v3557_v36, %v3556_v16  ;;  %v3848_v18 = vadd.f32 %v3847_v24, %v2408_v19 }
 0x264   : > { %3176 = vst [vmem:[%s5008_s10 + $0x58] sm:$0xff] %v3144_v37   ;;  %v2540_v26 = vadd.f32 %v4983_v41, %v2501_v46  ;;  %v2502_v9 = vmul.f32 %v3845_v58, %v4978_v42  ;;  %v3853_v50 = vadd.f32 %v4906_v56, %v3555_v62 }
 0x265   : > { %3175 = vst [vmem:[%s5008_s10 + $0x50] sm:$0xff] %v3139_v55   ;;  %v2538_v40 = vadd.f32 %v4983_v41, %v2499_v17  ;;  %v2500_v20 = vmul.f32 %v3848_v18, %v4978_v42  ;;  %v3859_v0 = vadd.f32 %v4914_v28, %v3558_v47 }
 0x266   : > { %v2541_v25 = vadd.f32 %v4983_v41, %v2502_v9  ;;  %v2572_v43 = vmax.f32 %v2540_v26, 0.0 }
 0x267   : > { %v2539_v11 = vadd.f32 %v4983_v41, %v2500_v20  ;;  %v3559_v51 = vpop.f32.mrb[140].mxu0  ;;  %v3731_v24 = vpop.f32.mrb[12].mxu1  ;;  %v2570_v56 = vmax.f32 %v2538_v40, 0.0 }
 0x268   : > { %v2573_v10 = vmax.f32 %v2541_v25, 0.0  ;;  %v3560_v14 = vpop.f32.mrb[141].mxu0  ;;  %v2421_v39 = vpop.f32.mrb[13].mxu1 }
 0x269   : > { %v2571_v52 = vmax.f32 %v2539_v11, 0.0  ;;  %v3561_v60 = vadd.f32 %v3560_v14, %v3559_v51  ;;  %v3854_v2 = vadd.f32 %v3853_v50, %v2421_v39  ;;  %v3562_v29 = vpop.f32.mrb[142].mxu0  ;;  %v3732_v35 = vpop.f32.mrb[14].mxu1 }
 0x26a   : > { %v3154_v4 = vpack.c.bf16 %v2573_v10, %v2572_v43  ;;  %v3563_v28 = vpop.f32.mrb[143].mxu0  ;;  %v2424_v31 = vpop.f32.mrb[15].mxu1 }
 0x26b   : > { %v3149_v22 = vpack.c.bf16 %v2571_v52, %v2570_v56  ;;  %v3850_v7 = vadd.f32 %v4924_v38, %v3561_v60  ;;  %v2503_v13 = vmul.f32 %v3854_v2, %v4978_v42  ;;  %v3564_v23 = vadd.f32 %v3563_v28, %v3562_v29 }
 0x26c   : > { %3178 = vst [vmem:[%s5008_s10 + $0x68] sm:$0xff] %v3154_v4   ;;  %v3860_v49 = vadd.f32 %v3859_v0, %v2424_v31 }
 0x26d   : > { %3177 = vst [vmem:[%s5008_s10 + $0x60] sm:$0xff] %v3149_v22   ;;  %v3851_v53 = vadd.f32 %v3850_v7, %v3731_v24  ;;  %v3856_v48 = vadd.f32 %v4932_v57, %v3564_v23  ;;  %v2542_v61 = vadd.f32 %v4983_v41, %v2503_v13 }
 0x26e   : > { %v2504_v21 = vmul.f32 %v3860_v49, %v4978_v42 }
 0x26f   : > { %v2505_v33 = vmul.f32 %v3851_v53, %v4978_v42  ;;  %v3857_v32 = vadd.f32 %v3856_v48, %v3732_v35  ;;  %v2574_v45 = vmax.f32 %v2542_v61, 0.0 }
 0x270   : > { %v2543_v38 = vadd.f32 %v4983_v41, %v2504_v21 }
 0x271   : > { %v2544_v5 = vadd.f32 %v4983_v41, %v2505_v33  ;;  %v2506_v59 = vmul.f32 %v3857_v32, %v4978_v42 }
 0x272   : > { %v2575_v6 = vmax.f32 %v2543_v38, 0.0 }
 0x273   : > { %v2545_v57 = vadd.f32 %v4983_v41, %v2506_v59  ;;  %v2576_v63 = vmax.f32 %v2544_v5, 0.0 }
 0x274   : > { %v3159_v1 = vpack.c.bf16 %v2575_v6, %v2574_v45 }
 0x275   : > { %v2577_v12 = vmax.f32 %v2545_v57, 0.0 }
 0x276   : > { %3179 = vst [vmem:[%s5008_s10 + $0x70] sm:$0xff] %v3159_v1  }
 0x277   : > { %v3164_v42 = vpack.c.bf16 %v2577_v12, %v2576_v63 }
 0x279   : > { %3180 = vst [vmem:[%s5008_s10 + $0x78] sm:$0xff] %v3164_v42  }
 0x27a   : > { %4205 = shalt.err (!%p4202_p7)
}
 0x27b   : > { %s4206_s20 = scalar_lea.hbm %s5120_s8, 2048  ;;  %s4210_s9 = scalar_lea.hbm %s5171_s4, 4096 }
 0x27c   : > { %p4207_p9 = scmp.ne.s32.totalorder %s5120_s8, %s4206_s20  ;;  %p4211_p5 = scmp.lt.u32.totalorder %s5120_s8, %s5171_s4 }
 0x27d   : > { %p4212_p11 = scmp.lt.u32.totalorder %s4210_s9, %s4206_s20  ;;  %p4214_p4 = scmp.lt.u32.totalorder %s4206_s20, %s5120_s8 }
 0x27e   : > { %p4208_p2 = pnand %p4207_p9, %p4389_p12 }
 0x27f   : > { %p4213_p1 = por %p4212_p11, %p4211_p5 }
 0x280   : > { %p4209_p0 = pneg %p4208_p2 }
 0x281   : > { %p4215_p6 = por %p4214_p4, %p4213_p1 }
 0x283   : > { %p4216_p8 = pnand %p4215_p6, %p4209_p0 }
 0x285   : > { %4219 = shalt.err (!%p4216_p8)
}
 0x286   : > { %s4271_s10 = smov 64   ;;  %s4272_s6 = smov 4  }
 0x287   : > { %3918 = dma.vmem_to_hbm [thread:$0]  (%p4389_p12), %s5122_s5, 2048, %s5120_s8, %s2739_s28, %s4271_s10, %s4271_s10, %s4272_s6  }
 0x288 PF: > { %s2767_s7 = sand.u32 1, %s4250_s15   ;;  %p5190_p10 = scmp.ne.s32.totalorder %s5176_s22, 0 }
 0x289   : > { %p5191_p13 = scmp.ge.s32.totalorder %s4262_s18, 2  ;;  %s2768_s26 = scalar_lea.sflag [#allocation4], %s2767_s7 }
 0x28b   : > { %p3929_p3 = pnand %p5191_p13, %p5190_p10 }
 0x28d   : > { %4245 = dma.done.wait (!%p3929_p3), %s2768_s26, 2048  }
 0x28e   : > { %4247 = vsyncadd (!%p3929_p3), %s2768_s26, 4294965248  ;;  %p18_p7 = scmp.ge.s32.totalorder %s4354_s27, 4   ;;  %s5192_s15 = smov %s4254_s16 }
 0x28f   : > { %s5193_s16 = smov %s4258_s17  ;;  %s5194_s17 = smov %s4385_s24 }
 0x290   : > { %s5195_s18 = smov %s4354_s27  ;;  %20 = sbr.rel (!%p18_p7) target bundleno = 6 (0x6), region = 87 }
 0x297   :  { %2773 = vsyncpa [#allocation3], 1 }
 0x298   :  { %2775 = vsyncpa [#allocation3 + $0x1], 1 }
 0x299   :  { %2776 = vsyncpa [#allocation6], 1 }
 0x29a   :  { %2777 = vsyncpa [#allocation4], 1 }
 0x29b   :  { %2779 = vsyncpa [#allocation4 + $0x1], 1 }

</bundles_post_ra>
